<compile_context>
chip_gen: v7x
topology: tpu7x:2x2x1
jax: 0.10.0
libtpu: 0.0.40
codegen_flags: <defaults>
</compile_context>

<pallas_src>
import functools
import math

import jax
import jax.numpy as jnp
import numpy as np
from jax.experimental import pallas as pl
from jax.experimental.pallas import tpu as pltpu


def _grouped_sine_kernel(x_ref, w_ref, b_ref, o_ref, *, G, Fout):
    # x_ref : (G, n_tile, Fin)   native-layout channel group (no wrapper pack)
    # w_ref : (G*Fin, G*Fout)    block-diagonal packed weight, omega pre-folded
    # b_ref : (1, G*Fout)        packed bias, omega pre-folded
    # o_ref : (G, n_tile, Fout)  native-layout output (no wrapper unpack)
    x_blk = x_ref[...]
    # Lane-pack the G channels: (G, n_tile, Fin) -> (n_tile, G*Fin).  XLU lane
    # concat; hidden under the MXU matmul.
    x_packed = jnp.concatenate([x_blk[g] for g in range(G)], axis=-1)
    # One MXU-sized matmul per grid step (>=128-wide contraction and output).
    y = jnp.dot(x_packed, w_ref[...], preferred_element_type=jnp.float32)
    # Bias + sine on the lane-dense packed value (VPU sees no lane padding).
    y = jnp.sin(y + b_ref[...])
    # Lane-unpack back to the native per-channel layout.
    for g in range(G):
        o_ref[g, :, :] = y[:, g * Fout:(g + 1) * Fout].astype(o_ref.dtype)


def _pick_group_size(Fin, Fout, cap=16):
    # Smallest G with G*Fin % 128 == 0 and G*Fout % 128 == 0 (lane-dense
    # contraction input and packed output), capped since the block-diagonal
    # zero fraction (G-1)/G and the w_bd size grow with G.
    g1 = 128 // math.gcd(Fin, 128)
    g2 = 128 // math.gcd(Fout, 128)
    G = (g1 * g2) // math.gcd(g1, g2)
    return max(1, min(G, cap))


def _pick_n_tile(N, G, Fin, Fout):
    # Double-buffered x + out blocks dominate VMEM; keep them well under the
    # scoped defaults (16 MiB v5e) and v7x's 64 MiB physical limit, while still
    # large enough to amortize the ~0.35us/grid-step pipeline overhead.
    budget = 12 << 20
    row_bytes = 2 * 4 * G * (Fin + Fout)          # db x block + db out block, per row
    cap = max(8, min(2048, (budget // row_bytes) // 8 * 8))
    if N <= cap:
        return N                                   # full dim -> always legal block
    for d in range(cap, 7, -1):
        if N % d == 0 and d % 8 == 0:
            return d
    # TODO(synk): pad N up to a tile multiple (and mask) when it has no
    # suitable divisor instead of falling back to a full-N block.
    return N


def adaptive_omega_sine_layer(x, indices, weight, bias, omega_0,
                              *, group_size=None, n_tile=None):
    """x: (C, N, Fin) f32, indices: (C,) i32, weight: (nC, Fin, Fout),
    bias: (nC, 1, Fout), omega_0: (nC, 1, 1). Returns (C, N, Fout)."""
    C, N, Fin = x.shape
    nC, Fin_w, Fout = weight.shape
    assert Fin_w == Fin
    dtype = x.dtype

    # omega is applied POSITIONALLY (broadcast over x's channel axis), exactly
    # as in the PyTorch forward; that broadcast requires n_channels in {1, C}.
    assert omega_0.shape[0] in (1, C), (
        "omega_0 broadcast requires n_channels == C (or == 1)")
    omega_c = jnp.broadcast_to(omega_0, (C, 1, 1)).reshape(C)

    G = _pick_group_size(Fin, Fout) if group_size is None else group_size
    C_pad = -(-C // G) * G
    n_groups = C_pad // G

    # --- gather channels and fold omega into weight/bias (removes the omega
    #     input stream and the per-element multiply in the kernel) ---
    w_g = weight[indices] * omega_c[:, None, None]      # (C, Fin, Fout)
    b_g = bias[indices][:, 0, :] * omega_c[:, None]     # (C, Fout)

    pad = C_pad - C
    if pad:
        # zero-padded channels -> sin(0)=0 rows, sliced off at the end
        x = jnp.pad(x, ((0, pad), (0, 0), (0, 0)))
        w_g = jnp.pad(w_g, ((0, pad), (0, 0), (0, 0)))
        b_g = jnp.pad(b_g, ((0, pad), (0, 0)))

    # Block-diagonal packed weight per group: (n_groups, G*Fin, G*Fout).
    w_grp = w_g.reshape(n_groups, G, Fin, Fout)
    eye = jnp.eye(G, dtype=w_g.dtype)
    w_bd = (jnp.einsum("gaio,ab->gaibo", w_grp, eye)
               .reshape(n_groups, G * Fin, G * Fout))
    b_packed = b_g.reshape(n_groups, 1, G * Fout)

    if n_tile is None:
        n_tile = _pick_n_tile(N, G, Fin, Fout)
    assert N % n_tile == 0

    # Explicit VMEM budget (don't rely on scoped defaults; stay under v7x 64MiB).
    est_vmem = (2 * 4 * G * n_tile * (Fin + Fout)      # db x + db out blocks
                + 2 * 4 * (G * Fin) * (G * Fout)       # db packed weight
                + 2 * 4 * G * Fout)                    # db packed bias
    vmem_limit = int(min(max(2 * est_vmem, 32 << 20), 48 << 20))

    grid = (n_groups, N // n_tile)

    grid_spec = pltpu.PrefetchScalarGridSpec(
        num_scalar_prefetch=0,
        grid=grid,
        in_specs=[
            # x in its NATIVE layout; the kernel lane-packs the G channels.
            pl.BlockSpec((G, n_tile, Fin), lambda g, t: (g, t, 0)),
            # Packed weight / bias ignore the N axis -> resident across N tiles.
            # (Optionally pl.Buffered(1) here to free VMEM when pushing n_tile.)
            pl.BlockSpec((pl.Squeezed(), G * Fin, G * Fout), lambda g, t: (g, 0, 0)),
            pl.BlockSpec((pl.Squeezed(), 1, G * Fout), lambda g, t: (g, 0, 0)),
        ],
        # Output written directly in the NATIVE (C, N, Fout) layout.
        out_specs=pl.BlockSpec((G, n_tile, Fout), lambda g, t: (g, t, 0)),
    )

    out = pl.pallas_call(
        functools.partial(_grouped_sine_kernel, G=G, Fout=Fout),
        out_shape=jax.ShapeDtypeStruct((C_pad, N, Fout), dtype),
        grid_spec=grid_spec,
        compiler_params=pltpu.CompilerParams(
            # No reduction axis: every (g, t) writes a distinct block, so both
            # axes are megacore-shardable (matters on v7x's 2 TCs).
            dimension_semantics=("parallel", "parallel"),
            vmem_limit_bytes=vmem_limit),
    )(x, w_bd, b_packed)

    return out[:C]


def init_params(key, in_features, out_features, n_channels,
                is_first=False, omega_0=3.0, const=1.0):
    """Deterministic re-implementation of AdaptiveOmegaSineLayer.__init__ /
    init_weights (the kaiming init is overwritten by init_weights, so only the
    final uniform bound matters)."""
    if is_first:
        bound = const / in_features
    else:
        bound = math.sqrt(const * 6.0 / in_features) / 30.0
    kw, kb = jax.random.split(key)
    weight = jax.random.uniform(
        kw, (n_channels, in_features, out_features),
        minval=-bound, maxval=bound, dtype=jnp.float32)
    bias = jax.random.uniform(
        kb, (n_channels, 1, out_features),
        minval=-bound, maxval=bound, dtype=jnp.float32)
    omega = jnp.ones((n_channels, 1, 1), dtype=jnp.float32) * omega_0
    return weight, bias, omega


if __name__ == "__main__":
    # Small shapes consistent with the module.
    n_channels = 4
    N = 64            # points per channel (bmm middle dim)
    in_features = 32
    out_features = 32

    key = jax.random.PRNGKey(0)
    kx, kp = jax.random.split(key)

    weight, bias, omega = init_params(
        kp, in_features, out_features, n_channels,
        is_first=False, omega_0=3.0, const=1.0)

    x = jax.random.normal(kx, (n_channels, N, in_features), dtype=jnp.float32)
    # a permutation of channels, to exercise the gather path weight[indices]
    indices = jnp.array([2, 0, 3, 1], dtype=jnp.int32)

    out = adaptive_omega_sine_layer(x, indices, weight, bias, omega)
    out = jax.block_until_ready(out)

    # Pure-JAX reference (matches torch.sin(omega * (bmm(x, W[idx]) + b[idx])))
    ref = jnp.sin(omega * (jnp.einsum("cnk,cko->cno", x, weight[indices])
                           + bias[indices]))
    np.testing.assert_allclose(np.asarray(out), np.asarray(ref),
                               rtol=1e-5, atol=1e-5)

    print("KERNEL_OK")
</pallas_src>

<mosaic_0001>
module attributes {stable_mosaic.version = 11 : i64} {
  func.func @_grouped_sine_kernel(%arg0: i32, %arg1: i32, %arg2: memref<4x64x32xf32, #tpu.memory_space<vmem>>, %arg3: memref<1x128x128xf32, #tpu.memory_space<vmem>>, %arg4: memref<1x1x128xf32, #tpu.memory_space<vmem>>, %arg5: memref<4x64x32xf32, #tpu.memory_space<vmem>>) attributes {dimension_semantics = [#tpu.dimension_semantics<parallel>, #tpu.dimension_semantics<parallel>], iteration_bounds = array<i64: 1, 1>, scalar_prefetch = 0 : i64, scratch_operands = 0 : i64, tpu.core_type = #tpu.core_type<tc>, window_params = [{transform_indices = @transform_0, window_bounds = array<i64: 4, 64, 32>}, {transform_indices = @transform_1, window_bounds = array<i64: 1, 128, 128>}, {transform_indices = @transform_2, window_bounds = array<i64: 1, 1, 128>}, {transform_indices = @transform_3, window_bounds = array<i64: 4, 64, 32>}]} {
    %c0 = arith.constant 0 : index
    %c0_0 = arith.constant 0 : index
    %c0_1 = arith.constant 0 : index
    %0 = vector.load %arg2[%c0, %c0_0, %c0_1] : memref<4x64x32xf32, #tpu.memory_space<vmem>>, vector<4x64x32xf32>
    %1 = vector.extract_strided_slice %0 {offsets = [0, 0, 0], sizes = [1, 64, 32], strides = [1, 1, 1]} : vector<4x64x32xf32> to vector<1x64x32xf32>
    %2 = vector.shape_cast %1 : vector<1x64x32xf32> to vector<64x32xf32>
    %3 = vector.extract_strided_slice %0 {offsets = [1, 0, 0], sizes = [1, 64, 32], strides = [1, 1, 1]} : vector<4x64x32xf32> to vector<1x64x32xf32>
    %4 = vector.shape_cast %3 : vector<1x64x32xf32> to vector<64x32xf32>
    %5 = vector.extract_strided_slice %0 {offsets = [2, 0, 0], sizes = [1, 64, 32], strides = [1, 1, 1]} : vector<4x64x32xf32> to vector<1x64x32xf32>
    %6 = vector.shape_cast %5 : vector<1x64x32xf32> to vector<64x32xf32>
    %7 = vector.extract_strided_slice %0 {offsets = [3, 0, 0], sizes = [1, 64, 32], strides = [1, 1, 1]} : vector<4x64x32xf32> to vector<1x64x32xf32>
    %8 = vector.shape_cast %7 : vector<1x64x32xf32> to vector<64x32xf32>
    %9 = tpu.concatenate %2, %4, %6, %8 in 1 : vector<64x32xf32>, vector<64x32xf32>, vector<64x32xf32>, vector<64x32xf32> -> vector<64x128xf32>
    %c0_2 = arith.constant 0 : index
    %c0_3 = arith.constant 0 : index
    %c0_4 = arith.constant 0 : index
    %10 = vector.load %arg3[%c0_2, %c0_3, %c0_4] : memref<1x128x128xf32, #tpu.memory_space<vmem>>, vector<1x128x128xf32>
    %11 = vector.shape_cast %10 : vector<1x128x128xf32> to vector<128x128xf32>
    %cst = arith.constant dense<0.000000e+00> : vector<64x128xf32>
    %12 = tpu.matmul %9, %11, %cst {dimension_numbers = #tpu.dot_dimension_numbers<[1], [0], [0], [1], [0, 0, 1, 1], [], []>} : vector<64x128xf32>, vector<128x128xf32>, vector<64x128xf32> -> vector<64x128xf32>
    %c0_5 = arith.constant 0 : index
    %c0_6 = arith.constant 0 : index
    %c0_7 = arith.constant 0 : index
    %13 = vector.load %arg4[%c0_5, %c0_6, %c0_7] : memref<1x1x128xf32, #tpu.memory_space<vmem>>, vector<1x1x128xf32>
    %14 = vector.shape_cast %13 : vector<1x1x128xf32> to vector<1x128xf32>
    %15 = vector.broadcast %14 : vector<1x128xf32> to vector<64x128xf32>
    %16 = arith.addf %12, %15 : vector<64x128xf32>
    %17 = math.sin %16 : vector<64x128xf32>
    %18 = vector.extract_strided_slice %17 {offsets = [0, 0], sizes = [64, 32], strides = [1, 1]} : vector<64x128xf32> to vector<64x32xf32>
    %c0_8 = arith.constant 0 : index
    %c0_9 = arith.constant 0 : index
    %c0_10 = arith.constant 0 : index
    %19 = vector.load %arg5[%c0_8, %c0_9, %c0_10] : memref<4x64x32xf32, #tpu.memory_space<vmem>>, vector<1x64x32xf32>
    %20 = vector.shape_cast %19 : vector<1x64x32xf32> to vector<64x32xf32>
    %21 = vector.shape_cast %18 : vector<64x32xf32> to vector<1x64x32xf32>
    tpu.vector_store %arg5[%c0_8, %c0_9, %c0_10], %21 {strides = array<i32>} : memref<4x64x32xf32, #tpu.memory_space<vmem>>, vector<1x64x32xf32>,
    %22 = vector.extract_strided_slice %17 {offsets = [0, 32], sizes = [64, 32], strides = [1, 1]} : vector<64x128xf32> to vector<64x32xf32>
    %c1 = arith.constant 1 : index
    %c0_11 = arith.constant 0 : index
    %c0_12 = arith.constant 0 : index
    %23 = vector.load %arg5[%c1, %c0_11, %c0_12] : memref<4x64x32xf32, #tpu.memory_space<vmem>>, vector<1x64x32xf32>
    %24 = vector.shape_cast %23 : vector<1x64x32xf32> to vector<64x32xf32>
    %25 = vector.shape_cast %22 : vector<64x32xf32> to vector<1x64x32xf32>
    tpu.vector_store %arg5[%c1, %c0_11, %c0_12], %25 {strides = array<i32>} : memref<4x64x32xf32, #tpu.memory_space<vmem>>, vector<1x64x32xf32>,
    %26 = vector.extract_strided_slice %17 {offsets = [0, 64], sizes = [64, 32], strides = [1, 1]} : vector<64x128xf32> to vector<64x32xf32>
    %c2 = arith.constant 2 : index
    %c0_13 = arith.constant 0 : index
    %c0_14 = arith.constant 0 : index
    %27 = vector.load %arg5[%c2, %c0_13, %c0_14] : memref<4x64x32xf32, #tpu.memory_space<vmem>>, vector<1x64x32xf32>
    %28 = vector.shape_cast %27 : vector<1x64x32xf32> to vector<64x32xf32>
    %29 = vector.shape_cast %26 : vector<64x32xf32> to vector<1x64x32xf32>
    tpu.vector_store %arg5[%c2, %c0_13, %c0_14], %29 {strides = array<i32>} : memref<4x64x32xf32, #tpu.memory_space<vmem>>, vector<1x64x32xf32>,
    %30 = vector.extract_strided_slice %17 {offsets = [0, 96], sizes = [64, 32], strides = [1, 1]} : vector<64x128xf32> to vector<64x32xf32>
    %c3 = arith.constant 3 : index
    %c0_15 = arith.constant 0 : index
    %c0_16 = arith.constant 0 : index
    %31 = vector.load %arg5[%c3, %c0_15, %c0_16] : memref<4x64x32xf32, #tpu.memory_space<vmem>>, vector<1x64x32xf32>
    %32 = vector.shape_cast %31 : vector<1x64x32xf32> to vector<64x32xf32>
    %33 = vector.shape_cast %30 : vector<64x32xf32> to vector<1x64x32xf32>
    tpu.vector_store %arg5[%c3, %c0_15, %c0_16], %33 {strides = array<i32>} : memref<4x64x32xf32, #tpu.memory_space<vmem>>, vector<1x64x32xf32>,
    return
  }
  func.func @transform_0(%arg0: i32, %arg1: i32) -> (i32, i32, i32) {
    %c0_i32 = arith.constant 0 : i32
    %c0_i32_0 = arith.constant 0 : i32
    return %arg0, %arg1, %c0_i32 : i32, i32, i32
  }
  func.func @transform_1(%arg0: i32, %arg1: i32) -> (i32, i32, i32) {
    %c0_i32 = arith.constant 0 : i32
    %c0_i32_0 = arith.constant 0 : i32
    %c0_i32_1 = arith.constant 0 : i32
    return %arg0, %c0_i32, %c0_i32_0 : i32, i32, i32
  }
  func.func @transform_2(%arg0: i32, %arg1: i32) -> (i32, i32, i32) {
    %c0_i32 = arith.constant 0 : i32
    %c0_i32_0 = arith.constant 0 : i32
    %c0_i32_1 = arith.constant 0 : i32
    return %arg0, %c0_i32, %c0_i32_0 : i32, i32, i32
  }
  func.func @transform_3(%arg0: i32, %arg1: i32) -> (i32, i32, i32) {
    %c0_i32 = arith.constant 0 : i32
    %c0_i32_0 = arith.constant 0 : i32
    return %arg0, %arg1, %c0_i32 : i32, i32, i32
  }
}

</mosaic_0001>

<bundles_post_ra>
// kernel: tpu_custom_call.1
= control target key start
LH: loop header
LB: loop body
LE: loop exit
PB: predicated region body
PF: predicated region fallthrough
CT: control target
= control target key end

     0   :  { %s1554_s28 = smov 64   ;;  %s1555_s29 = smov 32   ;;  %vm142_vm0 = vcmask 261120   ;;  %vm151_vm1 = vcmask 523264   ;;  %vm160_vm2 = vcmask 785408   ;;  %s2655_s0 = inlined_call_operand.vmem [shape: f32[4,64,32], index: 0, kind: input, shape index: {}]   ;;  %s2656_s1 = inlined_call_operand.vmem [shape: f32[1,128,128], index: 1, kind: input, shape index: {}]   ;;  %s2657_s2 = inlined_call_operand.vmem [shape: f32[1,1,128], index: 2, kind: input, shape index: {}]   ;;  %s2658_s3 = inlined_call_operand.vmem [shape: f32[4,64,32], index: 3, kind: output, shape index: {}]  }
   0x1   :  { %v30_v0 = vld [vmem:[%s2655_s0 + $0x80] sm:$0xff]  ;;  %v31_v5 = vld [vmem:[%s2655_s0 + $0x88] sm:$0xff]  ;;  %v25_v17 = vld [vmem:[%s2655_s0 + $0x58] sm:$0xff]  ;;  %s1556_s27 = smov 96  }
   0x2   :  { %v34_v1 = vld [vmem:[%s2655_s0 + $0xa0] sm:$0xff]  ;;  %v35_v6 = vld [vmem:[%s2655_s0 + $0xa8] sm:$0xff]  ;;  %v29_v18 = vld [vmem:[%s2655_s0 + $0x78] sm:$0xff] }
   0x3   :  { %v22_v2 = vld [vmem:[%s2655_s0 + $0x40] sm:$0xff]  ;;  %v1472_v3 = vpack.i.bf16 %v34_v1, %v30_v0  ;;  %v23_v8 = vld [vmem:[%s2655_s0 + $0x48] sm:$0xff]  ;;  %v1477_v10 = vpack.i.bf16 %v35_v6, %v31_v5  ;;  %v171_v22 = vld [vmem:[%s2656_s1 + $0x10] sm:$0xff]  ;;  %v1497_v28 = vpack.i.bf16 %v29_v18, %v25_v17 }
   0x4   :  { %v26_v4 = vld [vmem:[%s2655_s0 + $0x60] sm:$0xff]  ;;  %v27_v9 = vld [vmem:[%s2655_s0 + $0x68] sm:$0xff]  ;;  %v24_v23 = vld [vmem:[%s2655_s0 + $0x50] sm:$0xff] }
   0x5   :  { %v1462_v7 = vpack.i.bf16 %v26_v4, %v22_v2  ;;  %1473 = vrot.lane.b32.xlu1 %v1472_v3, %s1554_s28  ;;  %v1467_v11 = vpack.i.bf16 %v27_v9, %v23_v8  ;;  %v39_v12 = vld [vmem:[%s2655_s0 + $0xc8] sm:$0xff]  ;;  %v38_v14 = vld [vmem:[%s2655_s0 + $0xc0] sm:$0xff]  ;;  %v28_v24 = vld [vmem:[%s2655_s0 + $0x70] sm:$0xff] }
   0x6   :  { %v43_v13 = vld [vmem:[%s2655_s0 + $0xe8] sm:$0xff]  ;;  %v42_v15 = vld [vmem:[%s2655_s0 + $0xe0] sm:$0xff]  ;;  %v172_v26 = vld [vmem:[%s2656_s1 + $0x18] sm:$0xff]  ;;  %v1492_v31 = vpack.i.bf16 %v28_v24, %v24_v23 }
   0x7   :  { %1463 = vrot.lane.b32.xlu0 %v1462_v7, %s1555_s29  ;;  %v1487_v16 = vpack.i.bf16 %v43_v13, %v39_v12  ;;  %v1482_v19 = vpack.i.bf16 %v42_v15, %v38_v14  ;;  %v169_v20 = vld [vmem:[%s2656_s1] sm:$0xff]  ;;  %v170_v21 = vld [vmem:[%s2656_s1 + $0x8] sm:$0xff]  ;;  %v1377_v27 = vpack.c.bf16 %v172_v26, %v171_v22  ;;  %v33_v32 = vld [vmem:[%s2655_s0 + $0x98] sm:$0xff] }
   0x8   :  { %v1373_v25 = vpack.c.bf16 %v170_v21, %v169_v20  ;;  %v173_v29 = vld [vmem:[%s2656_s1 + $0x20] sm:$0xff]  ;;  %v174_v30 = vld [vmem:[%s2656_s1 + $0x28] sm:$0xff]  ;;  %v37_v33 = vld [vmem:[%s2655_s0 + $0xb8] sm:$0xff] }
   0x9   :  { %1478 = vrot.lane.b32.xlu1 %v1477_v10, %s1554_s28  ;;  %v32_v34 = vld [vmem:[%s2655_s0 + $0x90] sm:$0xff]  ;;  %v1381_v36 = vpack.c.bf16 %v174_v30, %v173_v29  ;;  %v1507_v37 = vpack.i.bf16 %v37_v33, %v33_v32  ;;  %v176_v39 = vld [vmem:[%s2656_s1 + $0x38] sm:$0xff]  ;;  %v177_v47 = vld [vmem:[%s2656_s1 + $0x40] sm:$0xff] }
   0xa   :  { %1374 = vmatprep.subr.bf16.mxu0 %v1373_v25  ;;  %1405 = vmatprep.subr.bf16.mxu1 %v1373_v25  ;;  %v36_v35 = vld [vmem:[%s2655_s0 + $0xb0] sm:$0xff]  ;;  %v41_v41 = vld [vmem:[%s2655_s0 + $0xd8] sm:$0xff]  ;;  %v178_v48 = vld [vmem:[%s2656_s1 + $0x48] sm:$0xff] }
   0xb   :  { %1468 = vrot.lane.b32.xlu0 %v1467_v11, %s1555_s29  ;;  %1376 = vmatpush3.bf16.msra.mxu0 %v1373_v25  ;;  %v175_v38 = vld [vmem:[%s2656_s1 + $0x30] sm:$0xff]  ;;  %v1502_v40 = vpack.i.bf16 %v36_v35, %v32_v34  ;;  %v45_v42 = vld [vmem:[%s2655_s0 + $0xf8] sm:$0xff]  ;;  %v1389_v50 = vpack.c.bf16 %v178_v48, %v177_v47  ;;  %v181_v54 = vld [vmem:[%s2656_s1 + $0x60] sm:$0xff] }
   0xc   :  { %1413 = vmatpush3.bf16.msra.mxu1 %v1373_v25  ;;  %1378 = vmatprep.subr.bf16.mxu0 %v1377_v27  ;;  %v40_v43 = vld [vmem:[%s2655_s0 + $0xd0] sm:$0xff]  ;;  %v1385_v45 = vpack.c.bf16 %v176_v39, %v175_v38  ;;  %v1517_v46 = vpack.i.bf16 %v45_v42, %v41_v41  ;;  %v180_v52 = vld [vmem:[%s2656_s1 + $0x58] sm:$0xff]  ;;  %v182_v55 = vld [vmem:[%s2656_s1 + $0x68] sm:$0xff] }
   0xd   :  { %1488 = vrot.lane.b32.xlu1 %v1487_v16, %s1556_s27  ;;  %1406 = vmatprep.subr.bf16.mxu1 %v1377_v27  ;;  %v44_v44 = vld [vmem:[%s2655_s0 + $0xf0] sm:$0xff]  ;;  %v1397_v56 = vpack.c.bf16 %v182_v55, %v181_v54  ;;  %v184_v58 = vld [vmem:[%s2656_s1 + $0x78] sm:$0xff]  ;;  %v14_v1 = vld [vmem:[%s2655_s0] sm:$0xff] }
   0xe   :  { %v1512_v49 = vpack.i.bf16 %v44_v44, %v40_v43  ;;  %v179_v51 = vld [vmem:[%s2656_s1 + $0x50] sm:$0xff]  ;;  %v18_v3 = vld [vmem:[%s2655_s0 + $0x20] sm:$0xff]  ;;  %v15_v4 = vld [vmem:[%s2655_s0 + $0x8] sm:$0xff] }
   0xf   :  { %1483 = vrot.lane.b32.xlu0 %v1482_v19, %s1556_s27  ;;  %1380 = vmatpush3.bf16.msra.mxu0 %v1377_v27  ;;  %v1393_v53 = vpack.c.bf16 %v180_v52, %v179_v51  ;;  %v183_v57 = vld [vmem:[%s2656_s1 + $0x70] sm:$0xff]  ;;  %v19_v5 = vld [vmem:[%s2655_s0 + $0x28] sm:$0xff] }
  0x10   :  { %1414 = vmatpush3.bf16.msra.mxu1 %v1377_v27  ;;  %1382 = vmatprep.subr.bf16.mxu0 %v1381_v36  ;;  %v1401_v59 = vpack.c.bf16 %v184_v58, %v183_v57  ;;  %v16_v38 = vld [vmem:[%s2655_s0 + $0x10] sm:$0xff] }
  0x11   :  { %1498 = vrot.lane.b32.xlu1 %v1497_v28, %s1555_s29  ;;  %1407 = vmatprep.subr.bf16.mxu1 %v1381_v36  ;;  %v20_v39 = vld [vmem:[%s2655_s0 + $0x30] sm:$0xff] }
  0x13   :  { %1493 = vrot.lane.b32.xlu0 %v1492_v31, %s1555_s29  ;;  %1384 = vmatpush3.bf16.msra.mxu0 %v1381_v36 }
  0x14   :  { %1415 = vmatpush3.bf16.msra.mxu1 %v1381_v36  ;;  %1386 = vmatprep.subr.bf16.mxu0 %v1385_v45  ;;  %v17_v36 = vld [vmem:[%s2655_s0 + $0x18] sm:$0xff] }
  0x15   :  { %1508 = vrot.lane.b32.xlu1 %v1507_v37, %s1554_s28  ;;  %1408 = vmatprep.subr.bf16.mxu1 %v1385_v45  ;;  %v21_v37 = vld [vmem:[%s2655_s0 + $0x38] sm:$0xff] }
  0x17   :  { %1503 = vrot.lane.b32.xlu0 %v1502_v40, %s1554_s28  ;;  %1388 = vmatpush3.bf16.msra.mxu0 %v1385_v45 }
  0x18   :  { %1416 = vmatpush3.bf16.msra.mxu1 %v1385_v45  ;;  %1390 = vmatprep.subr.bf16.mxu0 %v1389_v50 }
  0x19   :  { %1518 = vrot.lane.b32.xlu1 %v1517_v46, %s1556_s27  ;;  %1409 = vmatprep.subr.bf16.mxu1 %v1389_v50 }
  0x1b   :  { %1513 = vrot.lane.b32.xlu0 %v1512_v49, %s1556_s27  ;;  %1392 = vmatpush3.bf16.msra.mxu0 %v1389_v50 }
  0x1c   :  { %1417 = vmatpush3.bf16.msra.mxu1 %v1389_v50  ;;  %1394 = vmatprep.subr.bf16.mxu0 %v1393_v53 }
  0x1d   :  { %1410 = vmatprep.subr.bf16.mxu1 %v1393_v53 }
  0x1f   :  { %1396 = vmatpush3.bf16.msra.mxu0 %v1393_v53 }
  0x20   :  { %1418 = vmatpush3.bf16.msra.mxu1 %v1393_v53  ;;  %1398 = vmatprep.subr.bf16.mxu0 %v1397_v56 }
  0x21   :  { %1411 = vmatprep.subr.bf16.mxu1 %v1397_v56 }
  0x23   :  { %1400 = vmatpush3.bf16.msra.mxu0 %v1397_v56 }
  0x24   :  { %1419 = vmatpush3.bf16.msra.mxu1 %v1397_v56  ;;  %1402 = vmatprep.subr.bf16.mxu0 %v1401_v59 }
  0x25   :  { %1412 = vmatprep.subr.bf16.mxu1 %v1401_v59 }
  0x27   :  { %1404 = vmatpush3.bf16.msra.mxu0 %v1401_v59 }
  0x28   :  { %1420 = vmatpush3.bf16.msra.mxu1 %v1401_v59 }
  0x77   :  { %v1474_v60 = vpop.permute.xlu1 %1473 }
  0x78   :  { %v1476_v10 = vunpack.i.h.bf16 %v1474_v60  ;;  %v1475_v11 = vunpack.i.l.bf16 %v1474_v60 }
  0x79   :  { %v1464_v61 = vpop.permute.xlu0 %1463 }
  0x7a   :  { %v1466_v62 = vunpack.i.h.bf16 %v1464_v61  ;;  %v1465_v63 = vunpack.i.l.bf16 %v1464_v61 }
  0x7b   :  { %v1479_v0 = vpop.permute.xlu1 %1478 }
  0x7c   :  { %v1481_v6 = vunpack.i.h.bf16 %v1479_v0  ;;  %v1480_v7 = vunpack.i.l.bf16 %v1479_v0  ;;  %v143_v13 = vsel %vm142_vm0, %v14_v1, %v1465_v63  ;;  %v147_v14 = vsel %vm142_vm0, %v18_v3, %v1466_v62  ;;  %v1766_v0 = vld [vmem:[%s2657_s2] ss:$0 sm:$0xff] }
  0x7d   :  { %v1469_v2 = vpop.permute.xlu0 %1468  ;;  %v152_v24 = vsel %vm151_vm1, %v143_v13, %v1475_v11  ;;  %v156_v25 = vsel %vm151_vm1, %v147_v14, %v1476_v10 }
  0x7e   :  { %v1471_v8 = vunpack.i.h.bf16 %v1469_v2  ;;  %v1470_v9 = vunpack.i.l.bf16 %v1469_v2 }
  0x7f   :  { %v1489_v12 = vpop.permute.xlu1 %1488 }
  0x80   :  { %v144_v15 = vsel %vm142_vm0, %v15_v4, %v1470_v9  ;;  %v148_v16 = vsel %vm142_vm0, %v19_v5, %v1471_v8  ;;  %v1491_v17 = vunpack.i.h.bf16 %v1489_v12  ;;  %v1490_v18 = vunpack.i.l.bf16 %v1489_v12 }
  0x81   :  { %v1484_v19 = vpop.permute.xlu0 %1483  ;;  %v153_v22 = vsel %vm151_vm1, %v144_v15, %v1480_v7  ;;  %v157_v23 = vsel %vm151_vm1, %v148_v16, %v1481_v6 }
  0x82   :  { %v1486_v20 = vunpack.i.h.bf16 %v1484_v19  ;;  %v1485_v21 = vunpack.i.l.bf16 %v1484_v19  ;;  %v162_v26 = vsel %vm160_vm2, %v153_v22, %v1490_v18  ;;  %v166_v27 = vsel %vm160_vm2, %v157_v23, %v1491_v17 }
  0x83   :  { %v1499_v30 = vpop.permute.xlu1 %1498 }
  0x84   :  { %v161_v28 = vsel %vm160_vm2, %v152_v24, %v1485_v21  ;;  %v165_v29 = vsel %vm160_vm2, %v156_v25, %v1486_v20  ;;  %v1501_v32 = vunpack.i.h.bf16 %v1499_v30  ;;  %v1500_v33 = vunpack.i.l.bf16 %v1499_v30 }
  0x85   :  { %v1494_v31 = vpop.permute.xlu0 %1493  ;;  %1361 = vmatprep.mubr.f32.mxu0 %v161_v28  ;;  %1367 = vmatprep.mubr.f32.mxu1 %v165_v29 }
  0x86   :  { %v1496_v34 = vunpack.i.h.bf16 %v1494_v31  ;;  %v1495_v35 = vunpack.i.l.bf16 %v1494_v31  ;;  %1362 = vmatmul.mubr.f32.vlgmr.msra.gmra.mrb[0].mxu0 %v162_v26  ;;  %1368 = vmatmul.mubr.f32.vlgmr.msra.gmra.mrb[0].mxu1 %v166_v27  ;;  %v146_v44 = vsel %vm142_vm0, %v17_v36, %v1500_v33  ;;  %v150_v45 = vsel %vm142_vm0, %v21_v37, %v1501_v32 }
  0x87   :  { %v1509_v40 = vpop.permute.xlu1 %1508 }
  0x88   :  { %v1511_v42 = vunpack.i.h.bf16 %v1509_v40  ;;  %v1510_v43 = vunpack.i.l.bf16 %v1509_v40  ;;  %v145_v48 = vsel %vm142_vm0, %v16_v38, %v1495_v35  ;;  %v149_v49 = vsel %vm142_vm0, %v20_v39, %v1496_v34 }
  0x89   :  { %v1504_v41 = vpop.permute.xlu0 %1503 }
  0x8a   :  { %v1506_v46 = vunpack.i.h.bf16 %v1504_v41  ;;  %v1505_v47 = vunpack.i.l.bf16 %v1504_v41  ;;  %v155_v51 = vsel %vm151_vm1, %v146_v44, %v1510_v43  ;;  %v159_v52 = vsel %vm151_vm1, %v150_v45, %v1511_v42 }
  0x8b   :  { %v1519_v50 = vpop.permute.xlu1 %1518 }
  0x8c   :  { %v1521_v54 = vunpack.i.h.bf16 %v1519_v50  ;;  %v1520_v55 = vunpack.i.l.bf16 %v1519_v50  ;;  %v154_v56 = vsel %vm151_vm1, %v145_v48, %v1505_v47  ;;  %v158_v57 = vsel %vm151_vm1, %v149_v49, %v1506_v46 }
  0x8d   :  { %v1514_v53 = vpop.permute.xlu0 %1513  ;;  %v1557_v46 = vmov 683565275   ;;  %v1558_v48 = vmov 2475754826  }
  0x8e   :  { %v1516_v58 = vunpack.i.h.bf16 %v1514_v53  ;;  %v1515_v59 = vunpack.i.l.bf16 %v1514_v53  ;;  %v164_v60 = vsel %vm160_vm2, %v155_v51, %v1520_v55  ;;  %v168_v61 = vsel %vm160_vm2, %v159_v52, %v1521_v54 }
  0x8f   :  { %v1559_v51 = vmov 2131351028   ;;  %v1560_v53 = vmov 2102212464   ;;  %v1561_v55 = vmov 920167782  }
  0x90   :  { %v163_v62 = vsel %vm160_vm2, %v154_v56, %v1515_v59  ;;  %v167_v63 = vsel %vm160_vm2, %v158_v57, %v1516_v58 }
  0x91   :  { %1364 = vmatprep.mubr.f32.mxu0 %v163_v62  ;;  %1370 = vmatprep.mubr.f32.mxu1 %v167_v63  ;;  %v1562_v62 = vmov 1326507024  }
  0x92   :  { %1365 = vmatmul.mubr.f32.gmra.mrb[2].mxu0 %v164_v60  ;;  %1371 = vmatmul.mubr.f32.gmra.mrb[2].mxu1 %v168_v61 }
 0x159   :  { %v1363_v1 = vpop.f32.mrb[0].mxu0  ;;  %v1369_v2 = vpop.f32.mrb[0].mxu1 }
 0x15a   :  { %v1769_v3 = vadd.f32 %v1363_v1, %v1766_v0  ;;  %v1772_v4 = vadd.f32 %v1369_v2, %v1766_v0  ;;  %v258_v5 = vpop.f32.mrb[1].mxu0  ;;  %v278_v6 = vpop.f32.mrb[1].mxu1 }
 0x15b   :  { %v1775_v7 = vadd.f32 %v1766_v0, %v258_v5  ;;  %v1788_v18 = vadd.f32 %v1766_v0, %v278_v6 }
 0x15c   :  { %v401_v8 = vand.u32 2147483647, %v1769_v3  ;;  %v404_v9 = vand.u32 2139095040, %v1769_v3  ;;  %v817_v10 = vand.u32 2147483647, %v1772_v4  ;;  %v820_v11 = vand.u32 2139095040, %v1772_v4 }
 0x15d   :  { %v300_v14 = vand.u32 2139095040, %v1775_v7  ;;  %v297_v17 = vand.u32 2147483647, %v1775_v7  ;;  %v716_v28 = vand.u32 2139095040, %v1788_v18  ;;  %v713_v30 = vand.u32 2147483647, %v1788_v18 }
 0x15e   :  { %v405_v12 = vshrl.u32 %v404_v9, 23  ;;  %v408_v13 = vand.u32 8388607, %v401_v8  ;;  %v821_v15 = vshrl.u32 %v820_v11, 23  ;;  %v824_v16 = vand.u32 8388607, %v817_v10 }
 0x15f   :  { %v301_v20 = vshrl.u32 %v300_v14, 23  ;;  %v1792_v27 = vand.u32 8388607, %v297_v17  ;;  %v1811_v44 = vshrl.u32 %v716_v28, 23 }
 0x160   :  { %v1253_v19 = vadd.s32 4294967169, %v405_v12  ;;  %v409_v21 = vor.u32 8388608, %v408_v13  ;;  %v1269_v22 = vadd.s32 4294967169, %v821_v15  ;;  %v825_v23 = vor.u32 8388608, %v824_v16 }
 0x161   :  { %v1249_v25 = vadd.s32 4294967169, %v301_v20  ;;  %v305_v43 = vor.u32 8388608, %v1792_v27 }
 0x162   :  { %v411_v24 = vadd.s32 1, %v1253_v19  ;;  %v827_v26 = vadd.s32 1, %v1269_v22  ;;  %v1796_v32 = vshll.u32 %v409_v21, 8  ;;  %v1798_v33 = vshll.u32 %v825_v23, 8 }
 0x163   :  { %v307_v29 = vadd.s32 1, %v1249_v25 }
 0x164   :  { %vm412_vm3 = vcmp.gt.s32.totalorder %v411_v24, 0  ;;  %vm828_vm4 = vcmp.gt.s32.totalorder %v827_v26, 0 }
 0x165   :  { %v413_v31 = vsel %vm412_vm3, %v411_v24, 0  ;;  %v1800_v34 = vpop.f32.mrb[2].mxu0  ;;  %v1802_v35 = vpop.f32.mrb[2].mxu1  ;;  %v829_v38 = vsel %vm828_vm4, %v827_v26, 0  ;;  %vm308_vm5 = vcmp.gt.s32.totalorder %v307_v29, 0 }
 0x166   :  { %v414_v36 = vshrl.u32 %v413_v31, 5  ;;  %v415_v37 = vand.u32 31, %v413_v31  ;;  %v1804_v39 = vpop.f32.mrb[3].mxu0  ;;  %v1806_v40 = vpop.f32.mrb[3].mxu1  ;;  %v1808_v41 = vshrl.u32 %v829_v38, 5  ;;  %v831_v42 = vand.u32 31, %v829_v38 }
 0x167   :  { %v1815_v50 = vsel %vm308_vm5, %v307_v29, 0 }
 0x168   :  { %v416_v45 = vsub.s32 32, %v415_v37  ;;  %v418_v47 = vshll.u32 %v1557_v46, %v415_v37  ;;  %v421_v49 = vshll.u32 %v1558_v48, %v415_v37  ;;  %v424_v52 = vshll.u32 %v1559_v51, %v415_v37 }
 0x169   :  { %v427_v54 = vshll.u32 %v1560_v53, %v415_v37  ;;  %v430_v56 = vshll.u32 %v1561_v55, %v415_v37  ;;  %vm433_vm6 = vcmp.lt.s32.totalorder %v414_v36, 1  ;;  %vm434_vm7 = vcmp.lt.s32.totalorder %v414_v36, 2 }
 0x16a   :  { %v419_v57 = vshrl.u32 %v1558_v48, %v416_v45  ;;  %v422_v58 = vshrl.u32 %v1559_v51, %v416_v45  ;;  %v425_v59 = vshrl.u32 %v1560_v53, %v416_v45  ;;  %v417_v60 = vshrl.u32 %v1557_v46, %v416_v45 }
 0x16b   :  { %v428_v61 = vshrl.u32 %v1561_v55, %v416_v45  ;;  %v431_v63 = vshrl.u32 %v1562_v62, %v416_v45  ;;  %vm435_vm8 = vcmp.lt.s32.totalorder %v414_v36, 3  ;;  %v832_v6 = vsub.s32 32, %v831_v42 }
 0x16c   :  { %v420_v1 = vor.u32 %v419_v57, %v418_v47  ;;  %v423_v2 = vor.u32 %v422_v58, %v421_v49  ;;  %v426_v5 = vor.u32 %v425_v59, %v424_v52  ;;  %vm436_vm9 = vcmp.lt.s32.totalorder %v414_v36, 4 }
 0x16d   :  { %v429_v9 = vor.u32 %v428_v61, %v427_v54  ;;  %v432_v11 = vor.u32 %v431_v63, %v430_v56  ;;  %v834_v12 = vshll.u32 %v1557_v46, %v831_v42  ;;  %v837_v22 = vshll.u32 %v1558_v48, %v831_v42 }
 0x16e   :  { %v437_v13 = vsel %vm433_vm6, %v417_v60, %v420_v1  ;;  %v438_v14 = vsel %vm436_vm9, %v426_v5, 2102212464  ;;  %v441_v15 = vsel %vm433_vm6, %v420_v1, %v423_v2  ;;  %v445_v16 = vsel %vm433_vm6, %v423_v2, %v426_v5 }
 0x16f   :  { %v439_v19 = vsel %vm435_vm8, %v423_v2, %v438_v14  ;;  %v442_v20 = vsel %vm436_vm9, %v429_v9, 920167782  ;;  %v446_v21 = vsel %vm436_vm9, %v432_v11, 1326507024  ;;  %v833_v25 = vshrl.u32 %v1557_v46, %v832_v6 }
 0x170   :  { %v443_v23 = vsel %vm435_vm8, %v426_v5, %v442_v20  ;;  %v447_v24 = vsel %vm435_vm8, %v429_v9, %v446_v21  ;;  %v835_v26 = vshrl.u32 %v1558_v48, %v832_v6  ;;  %v440_v28 = vsel %vm434_vm7, %v437_v13, %v439_v19 }
 0x171   :  { %v444_v29 = vsel %vm434_vm7, %v441_v15, %v443_v23  ;;  %v448_v31 = vsel %vm434_vm7, %v445_v16, %v447_v24  ;;  %v838_v37 = vshrl.u32 %v1559_v51, %v832_v6  ;;  %v840_v56 = vshll.u32 %v1559_v51, %v831_v42 }
 0x172   :  { %v1841_v38 = vmul.u32.u64.low %v1796_v32, %v448_v31  ;;  %v1842_v45 = vmul.u32.u64.high %v1796_v32, %v448_v31, %v1841_v38  ;;  %v1845_v47 = vmul.u32.u64.low %v1796_v32, %v444_v29  ;;  %v1846_v49 = vmul.u32.u64.high %v1796_v32, %v444_v29, %v1845_v47 }
 0x173   :  { %v836_v52 = vor.u32 %v835_v26, %v834_v12  ;;  %v839_v54 = vor.u32 %v838_v37, %v837_v22  ;;  %v841_v57 = vshrl.u32 %v1560_v53, %v832_v6  ;;  %v456_v36 = vmul.u32 %v1796_v32, %v440_v28 }
 0x174   :  { %v843_v58 = vshll.u32 %v1560_v53, %v831_v42  ;;  %v844_v59 = vshrl.u32 %v1561_v55, %v832_v6  ;;  %v847_v60 = vshrl.u32 %v1562_v62, %v832_v6  ;;  %v846_v63 = vshll.u32 %v1561_v55, %v831_v42 }
 0x175   :  { %v842_v61 = vor.u32 %v841_v57, %v840_v56  ;;  %vm849_vm10 = vcmp.lt.s32.totalorder %v1808_v41, 1  ;;  %vm850_vm11 = vcmp.lt.s32.totalorder %v1808_v41, 2  ;;  %vm458_vm12 = vc.u32 %v1842_v45, %v1845_v47 }
 0x176   :  { %v459_v1 = vadd.s32 1, %v1846_v49  ;;  %v845_v2 = vor.u32 %v844_v59, %v843_v58  ;;  %vm851_vm13 = vcmp.lt.s32.totalorder %v1808_v41, 3  ;;  %v848_v32 = vor.u32 %v847_v60, %v846_v63 }
 0x177   :  { %vm852_vm14 = vcmp.lt.s32.totalorder %v1808_v41, 4  ;;  %v853_v5 = vsel %vm849_vm10, %v833_v25, %v836_v52  ;;  %v857_v6 = vsel %vm849_vm10, %v836_v52, %v839_v54  ;;  %v861_v12 = vsel %vm849_vm10, %v839_v54, %v842_v61 }
 0x178   :  { %v460_v9 = vsel %vm458_vm12, %v459_v1, %v1846_v49  ;;  %v854_v42 = vsel %vm852_vm14, %v842_v61, 2102212464  ;;  %v858_v11 = vsel %vm852_vm14, %v845_v2, 920167782  ;;  %v862_v16 = vsel %vm852_vm14, %v848_v32, 1326507024 }
 0x179   :  { %v461_v13 = vadd.s32 %v460_v9, %v456_v36  ;;  %v855_v14 = vsel %vm851_vm13, %v839_v54, %v854_v42  ;;  %v859_v15 = vsel %vm851_vm13, %v842_v61, %v858_v11  ;;  %v863_v21 = vsel %vm851_vm13, %v845_v2, %v862_v16 }
 0x17a   :  { %v856_v19 = vsel %vm850_vm11, %v853_v5, %v855_v14  ;;  %v860_v20 = vsel %vm850_vm11, %v857_v6, %v859_v15  ;;  %v310_v22 = vshrl.u32 %v1815_v50, 5  ;;  %v864_v24 = vsel %vm850_vm11, %v861_v12, %v863_v21 }
 0x17b   :  { %v462_v23 = vadd.s32 536870912, %v461_v13  ;;  %v1872_v25 = vmul.u32.u64.low %v1798_v33, %v860_v20  ;;  %v1873_v26 = vmul.u32.u64.high %v1798_v33, %v860_v20, %v1872_v25  ;;  %v311_v31 = vand.u32 31, %v1815_v50 }
 0x17c   :  { %v1877_v28 = vmul.u32.u64.low %v1798_v33, %v864_v24  ;;  %v1878_v29 = vmul.u32.u64.high %v1798_v33, %v864_v24, %v1877_v28  ;;  %v1883_v37 = vshll.u32 %v305_v43, 8  ;;  %v872_v41 = vmul.u32 %v1798_v33, %v856_v19 }
 0x17d   :  { %v1885_v38 = vshrl.u32 %v462_v23, 30  ;;  %vm329_vm15 = vcmp.lt.s32.totalorder %v310_v22, 1  ;;  %v1265_v49 = vadd.s32 4294967169, %v1811_v44  ;;  %v312_v52 = vsub.s32 32, %v311_v31 }
 0x17e   :  { %v314_v54 = vshll.u32 %v1557_v46, %v311_v31  ;;  %v317_v56 = vshll.u32 %v1558_v48, %v311_v31  ;;  %vm331_vm1 = vcmp.lt.s32.totalorder %v310_v22, 3  ;;  %v875_v50 = vadd.s32 1, %v1873_v26 }
 0x17f   :  { %v464_v57 = vshll.u32 %v1885_v38, 30  ;;  %v320_v27 = vshll.u32 %v1559_v51, %v311_v31  ;;  %v323_v43 = vshll.u32 %v1560_v53, %v311_v31  ;;  %vm874_vm2 = vc.u32 %v1878_v29, %v1872_v25 }
 0x180   :  { %v313_v33 = vshrl.u32 %v1557_v46, %v312_v52  ;;  %v315_v44 = vshrl.u32 %v1558_v48, %v312_v52  ;;  %v326_v36 = vshll.u32 %v1561_v55, %v311_v31  ;;  %v876_v59 = vsel %vm874_vm2, %v875_v50, %v1873_v26 }
 0x181   :  { %v465_v58 = vsub.s32 %v461_v13, %v464_v57  ;;  %v318_v60 = vshrl.u32 %v1559_v51, %v312_v52  ;;  %v321_v61 = vshrl.u32 %v1560_v53, %v312_v52  ;;  %v877_v63 = vadd.s32 %v876_v59, %v872_v41 }
 0x182   :  { %v316_v1 = vor.u32 %v315_v44, %v314_v54  ;;  %v324_v2 = vshrl.u32 %v1561_v55, %v312_v52  ;;  %v327_v32 = vshrl.u32 %v1562_v62, %v312_v52  ;;  %vm332_vm3 = vcmp.lt.s32.totalorder %v310_v22, 4 }
 0x183   :  { %v467_v5 = vsub.s32 0, %v465_v58  ;;  %v319_v6 = vor.u32 %v318_v60, %v317_v56  ;;  %v322_v9 = vor.u32 %v321_v61, %v320_v27  ;;  %v878_v42 = vadd.s32 536870912, %v877_v63 }
 0x184   :  { %v325_v11 = vor.u32 %v324_v2, %v323_v43  ;;  %v328_v12 = vor.u32 %v327_v32, %v326_v36  ;;  %v333_v13 = vsel %vm329_vm15, %v313_v33, %v316_v1  ;;  %vm330_vm4 = vcmp.lt.s32.totalorder %v310_v22, 2 }
 0x185   :  { %v1254_v14 = vmin.u32 %v467_v5, %v465_v58  ;;  %v334_v15 = vsel %vm332_vm3, %v322_v9, 2102212464  ;;  %v337_v16 = vsel %vm329_vm15, %v316_v1, %v319_v6  ;;  %v341_v19 = vsel %vm329_vm15, %v319_v6, %v322_v9 }
 0x186   :  { %v1908_v20 = vshrl.u32 %v878_v42, 30  ;;  %v335_v21 = vsel %vm331_vm1, %v319_v6, %v334_v15  ;;  %v338_v23 = vsel %vm332_vm3, %v325_v11, 920167782  ;;  %v342_v24 = vsel %vm332_vm3, %v328_v12, 1326507024 }
 0x187   :  { %v469_v26 = vclz %v1254_v14  ;;  %v339_v28 = vsel %vm331_vm1, %v322_v9, %v338_v23  ;;  %v343_v31 = vsel %vm331_vm1, %v325_v11, %v342_v24  ;;  %v720_v56 = vand.u32 8388607, %v713_v30 }
 0x188   :  { %v880_v41 = vshll.u32 %v1908_v20, 30  ;;  %v340_v52 = vsel %vm330_vm4, %v337_v16, %v339_v28  ;;  %v344_v54 = vsel %vm330_vm4, %v341_v19, %v343_v31  ;;  %v336_v50 = vsel %vm330_vm4, %v333_v13, %v335_v21 }
 0x189   :  { %v1255_v57 = vadd.s32 4294967294, %v469_v26  ;;  %v1917_v27 = vmul.u32.u64.low %v1883_v37, %v344_v54  ;;  %v1918_v43 = vmul.u32.u64.high %v1883_v37, %v344_v54, %v1917_v27  ;;  %v723_v22 = vadd.s32 1, %v1265_v49 }
 0x18a   :  { %v1920_v33 = vsub.s32 %v877_v63, %v880_v41  ;;  %v1923_v44 = vmul.u32.u64.low %v1883_v37, %v340_v52  ;;  %v1924_v36 = vmul.u32.u64.high %v1883_v37, %v340_v52, %v1923_v44  ;;  %v457_v59 = vadd.s32 %v1845_v47, %v1842_v45 }
 0x18b   :  { %vm1256_vm5 = vcmp.lt.s32.totalorder %v1255_v57, 0  ;;  %vm724_vm6 = vcmp.gt.s32.totalorder %v723_v22, 0  ;;  %v352_v32 = vmul.u32 %v1883_v37, %v336_v50  ;;  %v721_v63 = vor.u32 8388608, %v720_v56 }
 0x18c   :  { %v472_v60 = vsel %vm1256_vm5, 0, %v1255_v57  ;;  %v883_v61 = vsub.s32 0, %v1920_v33  ;;  %vm354_vm7 = vc.u32 %v1918_v43, %v1923_v44  ;;  %v355_v49 = vadd.s32 1, %v1924_v36 }
 0x18d   :  { %v473_v1 = vsub.s32 32, %v472_v60  ;;  %v477_v2 = vsub.s32 4294967266, %v472_v60  ;;  %v725_v6 = vsel %vm724_vm6, %v723_v22, 0  ;;  %v474_v9 = vshll.u32 %v465_v58, %v472_v60 }
 0x18e   :  { %v1270_v5 = vmin.u32 %v883_v61, %v1920_v33  ;;  %v727_v47 = vand.u32 31, %v725_v6  ;;  %v356_v12 = vsel %vm354_vm7, %v355_v49, %v1924_v36  ;;  %vm403_vm8 = vcmp.lt.s32.totalorder %v1769_v3, 0 }
 0x18f   :  { %v475_v42 = vshrl.u32 %v457_v59, %v473_v1  ;;  %v478_v45 = vadd.s32 127, %v477_v2  ;;  %v357_v15 = vadd.s32 %v356_v12, %v352_v32  ;;  %v873_v16 = vadd.s32 %v1872_v25, %v1878_v29 }
 0x190   :  { %v885_v11 = vclz %v1270_v5  ;;  %v728_v37 = vsub.s32 32, %v727_v47  ;;  %v1939_v21 = vshll.u32 %v721_v63, 8  ;;  %v1943_v58 = vadd.f32 %v1800_v34, %v1766_v0 }
 0x191   :  { %v476_v13 = vor.u32 %v475_v42, %v474_v9  ;;  %v479_v14 = vshll.u32 %v478_v45, 23  ;;  %vm1947_vm9 = vcmp.le.f32.partialorder %v401_v8, 0.7853982  ;;  %v358_v26 = vadd.s32 536870912, %v357_v15 }
 0x192   :  { %v1271_v19 = vadd.s32 4294967294, %v885_v11  ;;  %v1951_v28 = vshrl.u32 %v725_v6, 5  ;;  %v730_v31 = vshll.u32 %v1557_v46, %v727_v47  ;;  %v731_v29 = vshrl.u32 %v1558_v48, %v728_v37 }
 0x193   :  { %v480_v24 = vor.u32 4788187, %v479_v14  ;;  %v483_v25 = vcvt.s32.f32 %v476_v13  ;;  %v733_v41 = vshll.u32 %v1558_v48, %v727_v47  ;;  %v1956_v54 = vshrl.u32 %v358_v26, 30 }
 0x194   :  { %vm1272_vm10 = vcmp.lt.s32.totalorder %v1271_v19, 0  ;;  %v734_v8 = vshrl.u32 %v1559_v51, %v728_v37  ;;  %v736_v50 = vshll.u32 %v1559_v51, %v727_v47  ;;  %v737_v27 = vshrl.u32 %v1560_v53, %v728_v37 }
 0x195   :  { %v481_v34 = vand.u32 2147483647, %v480_v24  ;;  %v888_v52 = vsel %vm1272_vm10, 0, %v1271_v19  ;;  %v360_v59 = vshll.u32 %v1956_v54, 30  ;;  %v739_v60 = vshll.u32 %v1560_v53, %v727_v47 }
 0x196   :  { %v889_v56 = vsub.s32 32, %v888_v52  ;;  %v893_v57 = vsub.s32 4294967266, %v888_v52  ;;  %v890_v22 = vshll.u32 %v1920_v33, %v888_v52  ;;  %v732_v2 = vor.u32 %v731_v29, %v730_v31 }
 0x197   :  { %v484_v36 = vmul.f32 %v483_v25, %v481_v34  ;;  %v740_v32 = vshrl.u32 %v1561_v55, %v728_v37  ;;  %v1965_v5 = vsub.s32 %v357_v15, %v360_v59  ;;  %v735_v49 = vor.u32 %v734_v8, %v733_v41 }
 0x198   :  { %v891_v61 = vshrl.u32 %v873_v16, %v889_v56  ;;  %v894_v1 = vadd.s32 127, %v893_v57  ;;  %v743_v6 = vshrl.u32 %v1562_v62, %v728_v37  ;;  %v738_v45 = vor.u32 %v737_v27, %v736_v50 }
 0x199   :  { %v485_v63 = vxor.u32 2147483648, %v484_v36  ;;  %v742_v33 = vshll.u32 %v1561_v55, %v727_v47  ;;  %v363_v12 = vsub.s32 0, %v1965_v5  ;;  %v741_v13 = vor.u32 %v740_v32, %v739_v60 }
 0x19a   :  { %v892_v9 = vor.u32 %v891_v61, %v890_v22  ;;  %v895_v42 = vshll.u32 %v894_v1, 23  ;;  %v609_v14 = vand.u32 2147483647, %v1943_v58  ;;  %vm819_vm11 = vcmp.lt.s32.totalorder %v1772_v4, 0 }
 0x19b   :  { %v486_v11 = vsel %vm403_vm8, %v485_v63, %v484_v36  ;;  %v729_v19 = vshrl.u32 %v1557_v46, %v728_v37  ;;  %v744_v24 = vor.u32 %v743_v6, %v742_v33  ;;  %v1250_v47 = vmin.u32 %v363_v12, %v1965_v5 }
 0x19c   :  { %v489_v15 = vsel %vm1947_vm9, %v1769_v3, %v486_v11  ;;  %v896_v16 = vor.u32 4788187, %v895_v42  ;;  %vm745_vm12 = vcmp.lt.s32.totalorder %v1951_v28, 1  ;;  %vm746_vm13 = vcmp.lt.s32.totalorder %v1951_v28, 2 }
 0x19d   :  { %vm748_vm14 = vcmp.lt.s32.totalorder %v1951_v28, 4  ;;  %v899_v31 = vcvt.s32.f32 %v892_v9  ;;  %v753_v29 = vsel %vm745_vm12, %v732_v2, %v735_v49  ;;  %v365_v41 = vclz %v1250_v47 }
 0x19e   :  { %v897_v26 = vand.u32 2147483647, %v896_v16  ;;  %v750_v25 = vsel %vm748_vm14, %v738_v45, 2102212464  ;;  %vm747_vm15 = vcmp.lt.s32.totalorder %v1951_v28, 3  ;;  %v757_v52 = vsel %vm745_vm12, %v735_v49, %v738_v45 }
 0x19f   :  { %v754_v34 = vsel %vm748_vm14, %v741_v13, 920167782  ;;  %v749_v37 = vsel %vm745_vm12, %v729_v19, %v732_v2  ;;  %v758_v57 = vsel %vm748_vm14, %v744_v24, 1326507024  ;;  %v1251_v50 = vadd.s32 4294967294, %v365_v41 }
 0x1a0   :  { %v900_v8 = vmul.f32 %v899_v31, %v897_v26  ;;  %v755_v56 = vsel %vm747_vm15, %v738_v45, %v754_v34  ;;  %v751_v27 = vsel %vm747_vm15, %v735_v49, %v750_v25  ;;  %v759_v22 = vsel %vm747_vm15, %v741_v13, %v758_v57 }
 0x1a1   :  { %v756_v36 = vsel %vm746_vm13, %v753_v29, %v755_v56  ;;  %v760_v60 = vsel %vm746_vm13, %v757_v52, %v759_v22  ;;  %vm1252_vm1 = vcmp.lt.s32.totalorder %v1251_v50, 0  ;;  %v612_v63 = vand.u32 2139095040, %v1943_v58 }
 0x1a2   :  { %v901_v59 = vxor.u32 2147483648, %v900_v8  ;;  %v1988_v61 = vmul.u32.u64.low %v1939_v21, %v756_v36  ;;  %v1989_v1 = vmul.u32.u64.high %v1939_v21, %v756_v36, %v1988_v61  ;;  %vm1998_vm2 = vcmp.le.f32.partialorder %v817_v10, 0.7853982 }
 0x1a3   :  { %v1992_v32 = vmul.u32.u64.low %v1939_v21, %v760_v60  ;;  %v1993_v2 = vmul.u32.u64.high %v1939_v21, %v760_v60, %v1992_v32  ;;  %v353_v6 = vadd.s32 %v1923_v44, %v1918_v43  ;;  %v368_v9 = vsel %vm1252_vm1, 0, %v1251_v50 }
 0x1a4   :  { %v2006_v42 = vadd.f32 %v1802_v35, %v1766_v0  ;;  %v902_v45 = vsel %vm819_vm11, %v901_v59, %v900_v8  ;;  %v369_v33 = vsub.s32 32, %v368_v9  ;;  %v373_v11 = vsub.s32 4294967266, %v368_v9 }
 0x1a5   :  { %v752_v12 = vsel %vm746_vm13, %v749_v37, %v751_v27  ;;  %v771_v10 = vadd.s32 1, %v1989_v1  ;;  %v613_v13 = vshrl.u32 %v612_v63, 23  ;;  %v616_v16 = vand.u32 8388607, %v609_v14 }
 0x1a6   :  { %v2017_v43 = vadd.f32 %v1766_v0, %v1804_v39  ;;  %v370_v35 = vshll.u32 %v1965_v5, %v368_v9  ;;  %v371_v44 = vshrl.u32 %v353_v6, %v369_v33  ;;  %v374_v19 = vadd.s32 127, %v373_v11 }
 0x1a7   :  { %v1025_v24 = vand.u32 2147483647, %v2006_v42  ;;  %v905_v28 = vsel %vm1998_vm2, %v1772_v4, %v902_v45  ;;  %v768_v47 = vmul.u32 %v1939_v21, %v752_v12  ;;  %vm770_vm3 = vc.u32 %v1993_v2, %v1988_v61 }
 0x1a8   :  { %v1261_v26 = vadd.s32 4294967169, %v613_v13  ;;  %1522 = vcosq.f32 %v489_v15  ;;  %v372_v31 = vor.u32 %v371_v44, %v370_v35  ;;  %v375_v25 = vshll.u32 %v374_v19, 23 }
 0x1a9   :  { %v772_v39 = vsel %vm770_vm3, %v771_v10, %v1989_v1  ;;  %1524 = vsinq.f32 %v489_v15  ;;  %v617_v29 = vor.u32 8388608, %v616_v16  ;;  %v1028_v52 = vand.u32 2139095040, %v2006_v42 }
 0x1aa   :  { %v773_v5 = vadd.s32 %v772_v39, %v768_v47  ;;  %v619_v41 = vadd.s32 1, %v1261_v26  ;;  %1526 = vcosq.f32 %v905_v28  ;;  %v376_v34 = vor.u32 4788187, %v375_v25 }
 0x1ab   :  { %v2030_v8 = vand.u32 8388607, %v1025_v24  ;;  %1528 = vsinq.f32 %v905_v28  ;;  %vm299_vm5 = vcmp.lt.s32.totalorder %v1775_v7, 0  ;;  %v379_v56 = vcvt.s32.f32 %v372_v31 }
 0x1ac   :  { %v774_v21 = vadd.s32 536870912, %v773_v5  ;;  %vm620_vm4 = vcmp.gt.s32.totalorder %v619_v41, 0  ;;  %v377_v37 = vand.u32 2147483647, %v376_v34  ;;  %v2034_v15 = vadd.s32 %v1988_v61, %v1993_v2 }
 0x1ad   :  { %v621_v57 = vsel %vm620_vm4, %v619_v41, 0  ;;  %v2038_v36 = vshll.u32 %v617_v29, 8  ;;  %v505_v22 = vand.u32 2147483647, %v2017_v43  ;;  %v1029_v60 = vshrl.u32 %v1028_v52, 23 }
 0x1ae   :  { %v2036_v50 = vshrl.u32 %v774_v21, 30  ;;  %v623_v27 = vand.u32 31, %v621_v57  ;;  %v380_v59 = vmul.f32 %v379_v56, %v377_v37  ;;  %v1033_v1 = vor.u32 8388608, %v2030_v8 }
 0x1af   :  { %v508_v32 = vand.u32 2139095040, %v2017_v43  ;;  %vm2048_vm6 = vcmp.le.f32.partialorder %v297_v17, 0.7853982  ;;  %v622_v45 = vshrl.u32 %v621_v57, 5  ;;  %vm715_vm3 = vcmp.lt.s32.totalorder %v1788_v18, 0 }
 0x1b0   :  { %v776_v63 = vshll.u32 %v2036_v50, 30  ;;  %v624_v6 = vsub.s32 32, %v623_v27  ;;  %v626_v61 = vshll.u32 %v1557_v46, %v623_v27  ;;  %v629_v2 = vshll.u32 %v1558_v48, %v623_v27 }
 0x1b1   :  { %v632_v33 = vshll.u32 %v1559_v51, %v623_v27  ;;  %v635_v11 = vshll.u32 %v1560_v53, %v623_v27  ;;  %v638_v12 = vshll.u32 %v1561_v55, %v623_v27  ;;  %v381_v10 = vxor.u32 2147483648, %v380_v59 }
 0x1b2   :  { %v2055_v13 = vsub.s32 %v773_v5, %v776_v63  ;;  %v627_v16 = vshrl.u32 %v1558_v48, %v624_v6  ;;  %v630_v35 = vshrl.u32 %v1559_v51, %v624_v6  ;;  %v2059_v44 = vpop.eup %1522  ;;  %v625_v17 = vshrl.u32 %v1557_v46, %v624_v6 }
 0x1b3   :  { %v633_v19 = vshrl.u32 %v1560_v53, %v624_v6  ;;  %v636_v28 = vshrl.u32 %v1561_v55, %v624_v6  ;;  %v639_v47 = vshrl.u32 %v1562_v62, %v624_v6  ;;  %v2065_v26 = vpop.eup %1524  ;;  %v1277_v5 = vadd.s32 4294967169, %v1029_v60 }
 0x1b4   :  { %v779_v31 = vsub.s32 0, %v2055_v13  ;;  %v628_v25 = vor.u32 %v627_v16, %v626_v61  ;;  %v631_v39 = vor.u32 %v630_v35, %v629_v2  ;;  %v2068_v29 = vpop.eup %1526  ;;  %v509_v8 = vshrl.u32 %v508_v32, 23 }
 0x1b5   :  { %v634_v41 = vor.u32 %v633_v19, %v632_v33  ;;  %v637_v34 = vor.u32 %v636_v28, %v635_v11  ;;  %v640_v52 = vor.u32 %v639_v47, %v638_v12  ;;  %v2070_v21 = vpop.eup %1528  ;;  %v382_v37 = vsel %vm299_vm5, %v381_v10, %v380_v59 }
 0x1b6   :  { %v1266_v56 = vmin.u32 %v779_v31, %v2055_v13  ;;  %vm641_vm7 = vcmp.lt.s32.totalorder %v622_v45, 1  ;;  %vm642_vm10 = vcmp.lt.s32.totalorder %v622_v45, 2  ;;  %vm643_vm12 = vcmp.lt.s32.totalorder %v622_v45, 3 }
 0x1b7   :  { %vm644_vm13 = vcmp.lt.s32.totalorder %v622_v45, 4  ;;  %v645_v57 = vsel %vm641_vm7, %v625_v17, %v628_v25  ;;  %v649_v27 = vsel %vm641_vm7, %v628_v25, %v631_v39  ;;  %v653_v61 = vsel %vm641_vm7, %v631_v39, %v634_v41 }
 0x1b8   :  { %v781_v60 = vclz %v1266_v56  ;;  %v646_v63 = vsel %vm644_vm13, %v634_v41, 2102212464  ;;  %v650_v6 = vsel %vm644_vm13, %v637_v34, 920167782  ;;  %v654_v32 = vsel %vm644_vm13, %v640_v52, 1326507024 }
 0x1b9   :  { %v647_v2 = vsel %vm643_vm12, %v631_v39, %v646_v63  ;;  %v651_v33 = vsel %vm643_vm12, %v634_v41, %v650_v6  ;;  %v1035_v11 = vadd.s32 1, %v1277_v5  ;;  %v2078_v59 = vsel %vm2048_vm6, %v1775_v7, %v382_v37 }
 0x1ba   :  { %v1267_v12 = vadd.s32 4294967294, %v781_v60  ;;  %v652_v10 = vsel %vm642_vm10, %v649_v27, %v651_v33  ;;  %v655_v16 = vsel %vm643_vm12, %v637_v34, %v654_v32  ;;  %v648_v35 = vsel %vm642_vm10, %v645_v57, %v647_v2 }
 0x1bb   :  { %v656_v17 = vsel %vm642_vm10, %v653_v61, %v655_v16  ;;  %v2084_v19 = vmul.u32.u64.low %v2038_v36, %v652_v10  ;;  %v2085_v28 = vmul.u32.u64.high %v2038_v36, %v652_v10, %v2084_v19  ;;  %vm1036_vm15 = vcmp.gt.s32.totalorder %v1035_v11, 0 }
 0x1bc   :  { %vm1268_vm14 = vcmp.lt.s32.totalorder %v1267_v12, 0  ;;  %v2089_v47 = vmul.u32.u64.low %v2038_v36, %v656_v17  ;;  %v2090_v31 = vmul.u32.u64.high %v2038_v36, %v656_v17, %v2089_v47  ;;  %v1037_v39 = vsel %vm1036_vm15, %v1035_v11, 0 }
 0x1bd   :  { %v784_v25 = vsel %vm1268_vm14, 0, %v1267_v12  ;;  %v2092_v5 = vshll.u32 %v1033_v1, 8  ;;  %v2096_v41 = vand.u32 8388607, %v505_v22  ;;  %1530 = vcosq.f32 %v2078_v59 }
 0x1be   :  { %v785_v45 = vsub.s32 32, %v784_v25  ;;  %v789_v34 = vsub.s32 4294967266, %v784_v25  ;;  %v664_v52 = vmul.u32 %v2038_v36, %v648_v35  ;;  %v786_v37 = vshll.u32 %v2055_v13, %v784_v25 }
 0x1bf   :  { %v667_v56 = vadd.s32 1, %v2085_v28  ;;  %v1039_v57 = vand.u32 31, %v1037_v39  ;;  %v1257_v27 = vadd.s32 4294967169, %v509_v8  ;;  %vm666_vm1 = vc.u32 %v2090_v31, %v2084_v19 }
 0x1c0   :  { %v787_v60 = vshrl.u32 %v2034_v15, %v785_v45  ;;  %v790_v1 = vadd.s32 127, %v789_v34  ;;  %v1038_v63 = vshrl.u32 %v1037_v39, 5  ;;  %vm2117_vm4 = vcmp.le.f32.partialorder %v713_v30, 0.7853982 }
 0x1c1   :  { %v668_v6 = vsel %vm666_vm1, %v667_v56, %v2085_v28  ;;  %v1040_v61 = vsub.s32 32, %v1039_v57  ;;  %v1042_v2 = vshll.u32 %v1557_v46, %v1039_v57  ;;  %v1045_v36 = vshll.u32 %v1558_v48, %v1039_v57 }
 0x1c2   :  { %v788_v33 = vor.u32 %v787_v60, %v786_v37  ;;  %v791_v13 = vshll.u32 %v790_v1, 23  ;;  %v669_v32 = vadd.s32 %v668_v6, %v664_v52  ;;  %v1048_v11 = vshll.u32 %v1559_v51, %v1039_v57 }
 0x1c3   :  { %v1041_v15 = vshrl.u32 %v1557_v46, %v1040_v61  ;;  %v1043_v8 = vshrl.u32 %v1558_v48, %v1040_v61  ;;  %v1046_v12 = vshrl.u32 %v1559_v51, %v1040_v61  ;;  %v1049_v10 = vshrl.u32 %v1560_v53, %v1040_v61 }
 0x1c4   :  { %v792_v16 = vor.u32 4788187, %v791_v13  ;;  %v795_v35 = vcvt.s32.f32 %v788_v33  ;;  %v670_v17 = vadd.s32 536870912, %v669_v32  ;;  %v1051_v28 = vshll.u32 %v1560_v53, %v1039_v57 }
 0x1c5   :  { %v1044_v25 = vor.u32 %v1043_v8, %v1042_v2  ;;  %v1047_v39 = vor.u32 %v1046_v12, %v1045_v36  ;;  %v1050_v45 = vor.u32 %v1049_v10, %v1048_v11  ;;  %v1052_v34 = vshrl.u32 %v1561_v55, %v1040_v61 }
 0x1c6   :  { %v793_v52 = vand.u32 2147483647, %v792_v16  ;;  %v2122_v37 = vshrl.u32 %v670_v17, 30  ;;  %v1054_v56 = vshll.u32 %v1561_v55, %v1039_v57  ;;  %v1055_v60 = vshrl.u32 %v1562_v62, %v1040_v61 }
 0x1c7   :  { %v1053_v1 = vor.u32 %v1052_v34, %v1051_v28  ;;  %vm1057_vm7 = vcmp.lt.s32.totalorder %v1038_v63, 1  ;;  %vm1058_vm10 = vcmp.lt.s32.totalorder %v1038_v63, 2  ;;  %vm1059_vm12 = vcmp.lt.s32.totalorder %v1038_v63, 3  ;;  %v2126_v30 = vpop.eup %1530 }
 0x1c8   :  { %v796_v6 = vmul.f32 %v795_v35, %v793_v52  ;;  %v672_v2 = vshll.u32 %v2122_v37, 30  ;;  %v1056_v36 = vor.u32 %v1055_v60, %v1054_v56  ;;  %vm1060_vm13 = vcmp.lt.s32.totalorder %v1038_v63, 4 }
 0x1c9   :  { %v1061_v33 = vsel %vm1057_vm7, %v1041_v15, %v1044_v25  ;;  %v1062_v13 = vsel %vm1060_vm13, %v1050_v45, 2102212464  ;;  %v1065_v11 = vsel %vm1057_vm7, %v1044_v25, %v1047_v39  ;;  %v1066_v8 = vsel %vm1060_vm13, %v1053_v1, 920167782 }
 0x1ca   :  { %v797_v57 = vxor.u32 2147483648, %v796_v6  ;;  %v2131_v12 = vsub.s32 %v669_v32, %v672_v2  ;;  %v1063_v61 = vsel %vm1059_vm12, %v1047_v39, %v1062_v13  ;;  %v1067_v10 = vsel %vm1059_vm12, %v1050_v45, %v1066_v8 }
 0x1cb   :  { %v1068_v16 = vsel %vm1058_vm10, %v1065_v11, %v1067_v10  ;;  %v1069_v35 = vsel %vm1057_vm7, %v1047_v39, %v1050_v45  ;;  %v1070_v17 = vsel %vm1060_vm13, %v1056_v36, 1326507024  ;;  %v515_v28 = vadd.s32 1, %v1257_v27 }
 0x1cc   :  { %v798_v15 = vsel %vm715_vm3, %v797_v57, %v796_v6  ;;  %v675_v34 = vsub.s32 0, %v2131_v12  ;;  %v1071_v25 = vsel %vm1059_vm12, %v1053_v1, %v1070_v17  ;;  %v513_v32 = vor.u32 8388608, %v2096_v41 }
 0x1cd   :  { %v1064_v52 = vsel %vm1058_vm10, %v1061_v33, %v1063_v61  ;;  %v1072_v56 = vsel %vm1058_vm10, %v1069_v35, %v1071_v25  ;;  %v2145_v60 = vmul.u32.u64.low %v2092_v5, %v1068_v16  ;;  %v2146_v2 = vmul.u32.u64.high %v2092_v5, %v1068_v16, %v2145_v60 }
 0x1ce   :  { %v2152_v27 = vsel %vm2117_vm4, %v1788_v18, %v798_v15  ;;  %v1262_v39 = vmin.u32 %v675_v34, %v2131_v12  ;;  %v2156_v45 = vmul.u32.u64.low %v2092_v5, %v1072_v56  ;;  %v2157_v1 = vmul.u32.u64.high %v2092_v5, %v1072_v56, %v2156_v45 }
 0x1cf   :  { %1532 = vsinq.f32 %v2078_v59  ;;  %vm516_vm14 = vcmp.gt.s32.totalorder %v515_v28, 0  ;;  %v665_v41 = vadd.s32 %v2084_v19, %v2090_v31  ;;  %v2162_v36 = vshll.u32 %v513_v32, 8 }
 0x1d0   :  { %v677_v63 = vclz %v1262_v39  ;;  %v517_v6 = vsel %vm516_vm14, %v515_v28, 0  ;;  %1534 = vcosq.f32 %v2152_v27  ;;  %v1080_v33 = vmul.u32 %v2092_v5, %v1064_v52 }
 0x1d1   :  { %v1083_v13 = vadd.s32 1, %v2146_v2  ;;  %v519_v11 = vand.u32 31, %v517_v6  ;;  %vm1082_vm15 = vc.u32 %v2157_v1, %v2145_v60  ;;  %v2169_v59 = vshrl.u32 %v517_v6, 5 }
 0x1d2   :  { %v1263_v8 = vadd.s32 4294967294, %v677_v63  ;;  %v2173_v19 = vadd.f32 %v1766_v0, %v1806_v40  ;;  %vm611_vm10 = vcmp.lt.s32.totalorder %v1943_v58, 0  ;;  %1536 = vsinq.f32 %v2152_v27 }
 0x1d3   :  { %v1084_v31 = vsel %vm1082_vm15, %v1083_v13, %v2146_v2  ;;  %v520_v57 = vsub.s32 32, %v519_v11  ;;  %v522_v61 = vshll.u32 %v1557_v46, %v519_v11  ;;  %v525_v5 = vshll.u32 %v1558_v48, %v519_v11 }
 0x1d4   :  { %vm1264_vm1 = vcmp.lt.s32.totalorder %v1263_v8, 0  ;;  %v1085_v10 = vadd.s32 %v1084_v31, %v1080_v33  ;;  %v528_v16 = vshll.u32 %v1559_v51, %v519_v11  ;;  %v531_v35 = vshll.u32 %v1560_v53, %v519_v11 }
 0x1d5   :  { %v680_v17 = vsel %vm1264_vm1, 0, %v1263_v8  ;;  %v521_v28 = vshrl.u32 %v1557_v46, %v520_v57  ;;  %v523_v15 = vshrl.u32 %v1558_v48, %v520_v57  ;;  %v526_v0 = vshrl.u32 %v1559_v51, %v520_v57 }
 0x1d6   :  { %v681_v40 = vsub.s32 32, %v680_v17  ;;  %v682_v34 = vshll.u32 %v2131_v12, %v680_v17  ;;  %v685_v25 = vsub.s32 4294967266, %v680_v17  ;;  %v1086_v32 = vadd.s32 536870912, %v1085_v10 }
 0x1d7   :  { %v524_v52 = vor.u32 %v523_v15, %v522_v61  ;;  %v527_v56 = vor.u32 %v526_v0, %v525_v5  ;;  %v529_v2 = vshrl.u32 %v1560_v53, %v520_v57  ;;  %v532_v39 = vshrl.u32 %v1561_v55, %v520_v57 }
 0x1d8   :  { %v683_v45 = vshrl.u32 %v665_v41, %v681_v40  ;;  %v686_v63 = vadd.s32 127, %v685_v25  ;;  %v2186_v6 = vshrl.u32 %v1086_v32, 30  ;;  %v534_v33 = vshll.u32 %v1561_v55, %v519_v11 }
 0x1d9   :  { %v2189_v13 = vpop.eup %1532  ;;  %v530_v8 = vor.u32 %v529_v2, %v528_v16  ;;  %v533_v31 = vor.u32 %v532_v39, %v531_v35  ;;  %v535_v12 = vshrl.u32 %v1562_v62, %v520_v57  ;;  %vm537_vm7 = vcmp.lt.s32.totalorder %v2169_v59, 1 }
 0x1da   :  { %v684_v61 = vor.u32 %v683_v45, %v682_v34  ;;  %v687_v5 = vshll.u32 %v686_v63, 23  ;;  %v1088_v17 = vshll.u32 %v2186_v6, 30  ;;  %v921_v15 = vand.u32 2147483647, %v2173_v19  ;;  %v2195_v41 = vpop.eup %1534 }
 0x1db   :  { %v536_v0 = vor.u32 %v535_v12, %v534_v33  ;;  %vm538_vm12 = vcmp.lt.s32.totalorder %v2169_v59, 2  ;;  %vm539_vm13 = vcmp.lt.s32.totalorder %v2169_v59, 3  ;;  %vm540_vm14 = vcmp.lt.s32.totalorder %v2169_v59, 4 }
 0x1dc   :  { %v688_v11 = vor.u32 4788187, %v687_v5  ;;  %v2201_v57 = vsub.s32 %v1085_v10, %v1088_v17  ;;  %v541_v16 = vsel %vm537_vm7, %v521_v28, %v524_v52  ;;  %v542_v35 = vsel %vm540_vm14, %v530_v8, 2102212464 }
 0x1dd   :  { %vm2209_vm15 = vcmp.le.f32.partialorder %v609_v14, 0.7853982  ;;  %v691_v34 = vcvt.s32.f32 %v684_v61  ;;  %v543_v25 = vsel %vm539_vm13, %v527_v56, %v542_v35  ;;  %v545_v10 = vsel %vm537_vm7, %v524_v52, %v527_v56 }
 0x1de   :  { %v546_v32 = vsel %vm540_vm14, %v533_v31, 920167782  ;;  %v689_v28 = vand.u32 2147483647, %v688_v11  ;;  %v1091_v2 = vsub.s32 0, %v2201_v57  ;;  %v549_v14 = vsel %vm537_vm7, %v527_v56, %v530_v8 }
 0x1df   :  { %v547_v39 = vsel %vm539_vm13, %v530_v8, %v546_v32  ;;  %v544_v45 = vsel %vm538_vm12, %v541_v16, %v543_v25  ;;  %v550_v52 = vsel %vm540_vm14, %v536_v0, 1326507024  ;;  %v487_v33 = vsub.s32 4, %v1885_v38 }
 0x1e0   :  { %v548_v63 = vsel %vm538_vm12, %v545_v10, %v547_v39  ;;  %v692_v12 = vmul.f32 %v691_v34, %v689_v28  ;;  %v1278_v61 = vmin.u32 %v1091_v2, %v2201_v57  ;;  %v551_v5 = vsel %vm539_vm13, %v533_v31, %v550_v52 }
 0x1e1   :  { %v924_v17 = vand.u32 2139095040, %v2173_v19  ;;  %v552_v56 = vsel %vm538_vm12, %v549_v14, %v551_v5  ;;  %v2238_v8 = vmul.u32.u64.low %v2162_v36, %v548_v63  ;;  %v2239_v11 = vmul.u32.u64.high %v2162_v36, %v548_v63, %v2238_v8 }
 0x1e2   :  { %v928_v0 = vand.u32 8388607, %v921_v15  ;;  %v693_v16 = vxor.u32 2147483648, %v692_v12  ;;  %v1093_v35 = vclz %v1278_v61  ;;  %v488_v59 = vsel %vm403_vm8, %v487_v33, %v1885_v38 }
 0x1e3   :  { %v2244_v34 = vmul.u32.u64.low %v2162_v36, %v552_v56  ;;  %v2245_v25 = vmul.u32.u64.high %v2162_v36, %v552_v56, %v2244_v34  ;;  %v925_v31 = vshrl.u32 %v924_v17, 23  ;;  %v498_v10 = vxor.u32 2147483648, %v2065_v26 }
 0x1e4   :  { %v694_v32 = vsel %vm611_vm10, %v693_v16, %v692_v12  ;;  %v1279_v28 = vadd.s32 4294967294, %v1093_v35  ;;  %v929_v2 = vor.u32 8388608, %v928_v0  ;;  %v501_v39 = vxor.u32 2147483648, %v2059_v44 }
 0x1e5   :  { %v1081_v14 = vadd.s32 %v2145_v60, %v2157_v1  ;;  %v560_v63 = vmul.u32 %v2162_v36, %v544_v45  ;;  %v563_v27 = vadd.s32 1, %v2239_v11  ;;  %v1273_v52 = vadd.s32 4294967169, %v925_v31 }
 0x1e6   :  { %v2262_v38 = vsel %vm2209_vm15, %v1943_v58, %v694_v32  ;;  %vm1280_vm8 = vcmp.lt.s32.totalorder %v1279_v28, 0  ;;  %vm562_vm1 = vc.u32 %v2245_v25, %v2238_v8  ;;  %v490_v33 = vsel %vm1947_vm9, 0, %v488_v59 }
 0x1e7   :  { %v1096_v12 = vsel %vm1280_vm8, 0, %v1279_v28  ;;  %v564_v61 = vsel %vm562_vm1, %v563_v27, %v2239_v11  ;;  %v931_v60 = vadd.s32 1, %v1273_v52  ;;  %v383_v1 = vsub.s32 4, %v1956_v54 }
 0x1e8   :  { %v1097_v36 = vsub.s32 32, %v1096_v12  ;;  %v1101_v45 = vsub.s32 4294967266, %v1096_v12  ;;  %v565_v5 = vadd.s32 %v564_v61, %v560_v63  ;;  %v2269_v17 = vshll.u32 %v929_v2, 8 }
 0x1e9   :  { %1538 = vcosq.f32 %v2262_v38  ;;  %v1098_v56 = vshll.u32 %v2201_v57, %v1096_v12  ;;  %vm932_vm7 = vcmp.gt.s32.totalorder %v931_v60, 0  ;;  %v494_v0 = vadd.s32 3, %v490_v33 }
 0x1ea   :  { %v1099_v16 = vshrl.u32 %v1081_v14, %v1097_v36  ;;  %v1102_v23 = vadd.s32 127, %v1101_v45  ;;  %v566_v35 = vadd.s32 536870912, %v565_v5  ;;  %v933_v34 = vsel %vm932_vm7, %v931_v60, 0  ;;  %v2285_v14 = vpop.eup %1536 }
 0x1eb   :  { %v2274_v11 = vadd.s32 %v2238_v8, %v2245_v25  ;;  %v2276_v31 = vshrl.u32 %v933_v34, 5  ;;  %v935_v59 = vand.u32 31, %v933_v34  ;;  %v384_v32 = vsel %vm299_vm5, %v383_v1, %v1956_v54 }
 0x1ec   :  { %v1100_v28 = vor.u32 %v1099_v16, %v1098_v56  ;;  %v1103_v2 = vshll.u32 %v1102_v23, 23  ;;  %v2281_v63 = vshrl.u32 %v566_v35, 30  ;;  %v2283_v57 = vand.u32 3, %v494_v0 }
 0x1ed   :  { %vm1027_vm9 = vcmp.lt.s32.totalorder %v2006_v42, 0  ;;  %v936_v27 = vsub.s32 32, %v935_v59  ;;  %v938_v8 = vshll.u32 %v1557_v46, %v935_v59  ;;  %v941_v25 = vshll.u32 %v1558_v48, %v935_v59 }
 0x1ee   :  { %v944_v52 = vshll.u32 %v1559_v51, %v935_v59  ;;  %v1104_v33 = vor.u32 4788187, %v1103_v2  ;;  %v1107_v12 = vcvt.s32.f32 %v1100_v28  ;;  %v568_v54 = vshll.u32 %v2281_v63, 30 }
 0x1ef   :  { %v947_v61 = vshll.u32 %v1560_v53, %v935_v59  ;;  %v937_v60 = vshrl.u32 %v1557_v46, %v936_v27  ;;  %v939_v1 = vshrl.u32 %v1558_v48, %v936_v27  ;;  %v942_v36 = vshrl.u32 %v1559_v51, %v936_v27 }
 0x1f0   :  { %v945_v45 = vshrl.u32 %v1560_v53, %v936_v27  ;;  %vm2299_vm5 = vcmp.le.f32.partialorder %v1025_v24, 0.7853982  ;;  %v1105_v0 = vand.u32 2147483647, %v1104_v33  ;;  %v2303_v16 = vsub.s32 %v565_v5, %v568_v54 }
 0x1f1   :  { %v948_v23 = vshrl.u32 %v1561_v55, %v936_v27  ;;  %v950_v35 = vshll.u32 %v1561_v55, %v935_v59  ;;  %v940_v46 = vor.u32 %v939_v1, %v938_v8  ;;  %v943_v34 = vor.u32 %v942_v36, %v941_v25 }
 0x1f2   :  { %v946_v48 = vor.u32 %v945_v45, %v944_v52  ;;  %v951_v51 = vshrl.u32 %v1562_v62, %v936_v27  ;;  %v1108_v28 = vmul.f32 %v1107_v12, %v1105_v0  ;;  %v571_v53 = vsub.s32 0, %v2303_v16 }
 0x1f3   :  { %v949_v2 = vor.u32 %v948_v23, %v947_v61  ;;  %vm953_vm12 = vcmp.lt.s32.totalorder %v2276_v31, 1  ;;  %v2310_v24 = vpop.eup %1538  ;;  %vm954_vm13 = vcmp.lt.s32.totalorder %v2276_v31, 2  ;;  %vm956_vm14 = vcmp.lt.s32.totalorder %v2276_v31, 4 }
 0x1f4   :  { %v952_v33 = vor.u32 %v951_v51, %v950_v35  ;;  %v386_v55 = vsel %vm2048_vm6, 0, %v384_v32  ;;  %v1109_v5 = vxor.u32 2147483648, %v1108_v28  ;;  %v1258_v59 = vmin.u32 %v571_v53, %v2303_v16 }
 0x1f5   :  { %vm955_vm8 = vcmp.lt.s32.totalorder %v2276_v31, 3  ;;  %v958_v62 = vsel %vm956_vm14, %v946_v48, 2102212464  ;;  %v957_v27 = vsel %vm953_vm12, %v937_v60, %v940_v46  ;;  %v961_v25 = vsel %vm953_vm12, %v940_v46, %v943_v34 }
 0x1f6   :  { %v959_v8 = vsel %vm955_vm8, %v943_v34, %v958_v62  ;;  %v962_v9 = vsel %vm956_vm14, %v949_v2, 920167782  ;;  %v1110_v32 = vsel %vm1027_vm9, %v1109_v5, %v1108_v28  ;;  %v573_v52 = vclz %v1258_v59 }
 0x1f7   :  { %v963_v12 = vsel %vm955_vm8, %v946_v48, %v962_v9  ;;  %v965_v54 = vsel %vm953_vm12, %v943_v34, %v946_v48  ;;  %vm493_vm6 = vweird.f32 %v1769_v3  ;;  %1540 = vsinq.f32 %v2262_v38 }
 0x1f8   :  { %v964_v61 = vsel %vm954_vm13, %v961_v25, %v963_v12  ;;  %v966_v60 = vsel %vm956_vm14, %v952_v33, 1326507024  ;;  %v390_v1 = vadd.s32 3, %v386_v55  ;;  %v1259_v36 = vadd.s32 4294967294, %v573_v52 }
 0x1f9   :  { %v960_v45 = vsel %vm954_vm13, %v957_v27, %v959_v8  ;;  %v967_v0 = vsel %vm955_vm8, %v949_v2, %v966_v60  ;;  %v394_v23 = vxor.u32 2147483648, %v2189_v13  ;;  %v1113_v38 = vsel %vm2299_vm5, %v2006_v42, %v1110_v32 }
 0x1fa   :  { %v968_v35 = vsel %vm954_vm13, %v965_v54, %v967_v0  ;;  %v2351_v46 = vmul.u32.u64.low %v2269_v17, %v964_v61  ;;  %v2352_v34 = vmul.u32.u64.high %v2269_v17, %v964_v61, %v2351_v46  ;;  %vm1260_vm1 = vcmp.lt.s32.totalorder %v1259_v36, 0 }
 0x1fb   :  { %v2356_v48 = vmul.u32.u64.low %v2269_v17, %v968_v35  ;;  %v2357_v51 = vmul.u32.u64.high %v2269_v17, %v968_v35, %v2356_v48  ;;  %vm497_vm7 = vcmp.eq.s32.totalorder %v2283_v57, 0  ;;  %v576_v28 = vsel %vm1260_vm1, 0, %v1259_v36 }
 0x1fc   :  { %v499_v53 = vsel %vm497_vm7, %v2059_v44, %v498_v10  ;;  %vm500_vm12 = vcmp.eq.s32.totalorder %v2283_v57, 2  ;;  %v391_v31 = vand.u32 3, %v390_v1  ;;  %v577_v2 = vsub.s32 32, %v576_v28 }
 0x1fd   :  { %v581_v33 = vsub.s32 4294967266, %v576_v28  ;;  %vm496_vm13 = vcmp.lt.s32.totalorder %v2283_v57, 2  ;;  %v502_v55 = vsel %vm500_vm12, %v501_v39, %v2065_v26  ;;  %v578_v5 = vshll.u32 %v2303_v16, %v576_v28 }
 0x1fe   :  { %v976_v59 = vmul.u32 %v2269_v17, %v960_v45  ;;  %v979_v62 = vadd.s32 1, %v2352_v34  ;;  %v503_v27 = vsel %vm496_vm13, %v499_v53, %v502_v55  ;;  %v579_v10 = vshrl.u32 %v2274_v11, %v577_v2 }
 0x1ff   :  { %v582_v8 = vadd.s32 127, %v581_v33  ;;  %vm978_vm14 = vc.u32 %v2357_v51, %v2351_v46  ;;  %vm393_vm8 = vcmp.eq.s32.totalorder %v391_v31, 0  ;;  %1542 = vcosq.f32 %v1113_v38 }
 0x200   :  { %v980_v57 = vsel %vm978_vm14, %v979_v62, %v2352_v34  ;;  %v2377_v44 = vsel %vm493_vm6, nan, %v503_v27  ;;  %v395_v26 = vsel %vm393_vm8, %v2126_v30, %v394_v23  ;;  %v580_v39 = vor.u32 %v579_v10, %v578_v5 }
 0x201   :  { %v583_v17 = vshll.u32 %v582_v8, 23  ;;  %v981_v16 = vadd.s32 %v980_v57, %v976_v59  ;;  %1147 = vrot.lane.b32.xlu1 %v2377_v44, %s1556_s27  ;;  %1130 = vst.msk [vmem:[%s2658_s3 + $0x8] sm:$0xff] %vm142_vm0, %v2377_v44  ;;  %v397_v11 = vxor.u32 2147483648, %v2126_v30  ;;  %v2388_v25 = vpop.eup %1540  ;;  %1544 = vsinq.f32 %v1113_v38 }
 0x202   :  { %vm507_vm6 = vcmp.lt.s32.totalorder %v2017_v43, 0  ;;  %vm389_vm1 = vweird.f32 %v1775_v7  ;;  %vm396_vm7 = vcmp.eq.s32.totalorder %v391_v31, 2  ;;  %v903_v3 = vsub.s32 4, %v1908_v20 }
 0x203   :  { %vm2395_vm12 = vcmp.le.f32.partialorder %v505_v22, 0.7853982  ;;  %v584_v32 = vor.u32 4788187, %v583_v17  ;;  %v982_v52 = vadd.s32 536870912, %v981_v16  ;;  %vm392_vm13 = vcmp.lt.s32.totalorder %v391_v31, 2 }
 0x204   :  { %v398_v30 = vsel %vm396_vm7, %v397_v11, %v2189_v13  ;;  %v587_v12 = vcvt.s32.f32 %v580_v39  ;;  %v904_v7 = vsel %vm819_vm11, %v903_v3, %v1908_v20  ;;  %vm909_vm14 = vweird.f32 %v1772_v4 }
 0x205   :  { %v399_v54 = vsel %vm392_vm13, %v395_v26, %v398_v30  ;;  %v799_v61 = vsub.s32 4, %v2036_v50  ;;  %v585_v60 = vand.u32 2147483647, %v584_v32  ;;  %v2405_v22 = vshrl.u32 %v982_v52, 30 }
 0x206   :  { %v2407_v1 = vsel %vm389_vm1, nan, %v399_v54  ;;  %v906_v36 = vsel %vm1998_vm2, 0, %v904_v7  ;;  %v914_v13 = vxor.u32 2147483648, %v2070_v21  ;;  %v917_v45 = vxor.u32 2147483648, %v2068_v29 }
 0x207   :  { %1145 = vrot.lane.b32.xlu0 %v2407_v1, %s1556_s27  ;;  %1129 = vst.msk [vmem:[%s2658_s3] sm:$0xff] %vm142_vm0, %v2407_v1  ;;  %v910_v20 = vadd.s32 3, %v906_v36  ;;  %v800_v0 = vsel %vm715_vm3, %v799_v61, %v2036_v50  ;;  %v588_v49 = vmul.f32 %v587_v12, %v585_v60  ;;  %v984_v23 = vshll.u32 %v2405_v22, 30 }
 0x208   :  { %v802_v38 = vsel %vm2117_vm4, 0, %v800_v0  ;;  %v695_v35 = vsub.s32 4, %v2122_v37  ;;  %vm805_vm11 = vweird.f32 %v1788_v18  ;;  %v810_v28 = vxor.u32 2147483648, %v2285_v14 }
 0x209   :  { %v911_v34 = vand.u32 3, %v910_v20  ;;  %v806_v48 = vadd.s32 3, %v802_v38  ;;  %v589_v53 = vxor.u32 2147483648, %v588_v49  ;;  %v2429_v31 = vsub.s32 %v981_v16, %v984_v23  ;;  %v2435_v33 = vpop.eup %1542 }
 0x20a   :  { %v813_v2 = vxor.u32 2147483648, %v2195_v41  ;;  %v696_v50 = vsel %vm611_vm10, %v695_v35, %v2122_v37  ;;  %v706_v8 = vxor.u32 2147483648, %v2388_v25  ;;  %v591_v4 = vsub.s32 4, %v2281_v63 }
 0x20b   :  { %vm912_vm2 = vcmp.lt.s32.totalorder %v911_v34, 2  ;;  %vm913_vm3 = vcmp.eq.s32.totalorder %v911_v34, 0  ;;  %vm916_vm4 = vcmp.eq.s32.totalorder %v911_v34, 2  ;;  %v807_v47 = vand.u32 3, %v806_v48  ;;  %v2442_v27 = vpop.eup %1544 }
 0x20c   :  { %v590_v55 = vsel %vm507_vm6, %v589_v53, %v588_v49  ;;  %v987_v5 = vsub.s32 0, %v2429_v31  ;;  %v915_v59 = vsel %vm913_vm3, %v2068_v29, %v914_v13  ;;  %v918_v62 = vsel %vm916_vm4, %v917_v45, %v2070_v21 }
 0x20d   :  { %v593_v37 = vsel %vm2395_vm12, %v2017_v43, %v590_v55  ;;  %v919_v10 = vsel %vm912_vm2, %v915_v59, %v918_v62  ;;  %vm809_vm10 = vcmp.eq.s32.totalorder %v807_v47, 0  ;;  %vm812_vm8 = vcmp.eq.s32.totalorder %v807_v47, 2 }
 0x20e   :  { %1546 = vcosq.f32 %v593_v37  ;;  %v1274_v57 = vmin.u32 %v987_v5, %v2429_v31  ;;  %v2451_v26 = vsel %vm909_vm14, nan, %v919_v10  ;;  %v811_v29 = vsel %vm809_vm10, %v2195_v41, %v810_v28 }
 0x20f   :  { %1548 = vsinq.f32 %v593_v37  ;;  %1134 = vst.msk [vmem:[%s2658_s3 + $0x28] sm:$0xff] %vm142_vm0, %v2451_v26  ;;  %1155 = vrot.lane.b32.xlu1 %v2451_v26, %s1556_s27  ;;  %v698_v21 = vsel %vm2209_vm15, 0, %v696_v50  ;;  %vm808_vm1 = vcmp.lt.s32.totalorder %v807_v47, 2  ;;  %v814_v41 = vsel %vm812_vm8, %v813_v2, %v2285_v14 }
 0x210   :  { %v989_v39 = vclz %v1274_v57  ;;  %v702_v17 = vadd.s32 3, %v698_v21  ;;  %v815_v16 = vsel %vm808_vm1, %v811_v29, %v814_v41  ;;  %v709_v11 = vxor.u32 2147483648, %v2310_v24 }
 0x211   :  { %v592_v3 = vsel %vm507_vm6, %v591_v4, %v2281_v63  ;;  %v1111_v32 = vsub.s32 4, %v2186_v6  ;;  %v2472_v40 = vsel %vm805_vm11, nan, %v815_v16  ;;  %v977_v14 = vadd.s32 %v2351_v46, %v2357_v51 }
 0x212   :  { %v1275_v52 = vadd.s32 4294967294, %v989_v39  ;;  %v703_v30 = vand.u32 3, %v702_v17  ;;  %v594_v12 = vsel %vm2395_vm12, 0, %v592_v3  ;;  %1133 = vst.msk [vmem:[%s2658_s3 + $0x20] sm:$0xff] %vm142_vm0, %v2472_v40  ;;  %1153 = vrot.lane.b32.xlu0 %v2472_v40, %s1556_s27  ;;  %vm701_vm15 = vweird.f32 %v1943_v58 }
 0x213   :  { %1180 = vrot.lane.b32.xlu1 %v2377_v44, %s1554_s28  ;;  %v598_v18 = vadd.s32 3, %v594_v12  ;;  %v1112_v63 = vsel %vm1027_vm9, %v1111_v32, %v2186_v6  ;;  %v1122_v58 = vxor.u32 2147483648, %v2442_v27  ;;  %v1125_v23 = vxor.u32 2147483648, %v2435_v33 }
 0x214   :  { %vm1276_vm6 = vcmp.lt.s32.totalorder %v1275_v52, 0  ;;  %vm705_vm7 = vcmp.eq.s32.totalorder %v703_v30, 0  ;;  %vm708_vm12 = vcmp.eq.s32.totalorder %v703_v30, 2  ;;  %vm704_vm13 = vcmp.lt.s32.totalorder %v703_v30, 2 }
 0x215   :  { %v992_v46 = vsel %vm1276_vm6, 0, %v1275_v52  ;;  %v707_v51 = vsel %vm705_vm7, %v2310_v24, %v706_v8  ;;  %v710_v9 = vsel %vm708_vm12, %v709_v11, %v2388_v25  ;;  %v599_v60 = vand.u32 3, %v598_v18 }
 0x216   :  { %v993_v54 = vsub.s32 32, %v992_v46  ;;  %v997_v7 = vsub.s32 4294967266, %v992_v46  ;;  %v711_v61 = vsel %vm704_vm13, %v707_v51, %v710_v9  ;;  %1178 = vrot.lane.b32.xlu0 %v2407_v1, %s1554_s28  ;;  %v994_v20 = vshll.u32 %v2429_v31, %v992_v46 }
 0x217   :  { %1188 = vrot.lane.b32.xlu1 %v2451_v26, %s1554_s28  ;;  %v2499_v36 = vsel %vm701_vm15, nan, %v711_v61  ;;  %v1114_v25 = vsel %vm2299_vm5, 0, %v1112_v63  ;;  %vm604_vm9 = vcmp.eq.s32.totalorder %v599_v60, 2  ;;  %vm597_vm14 = vweird.f32 %v2017_v43 }
 0x218   :  { %v1547_v6 = vpop.eup %1546  ;;  %v995_v24 = vshrl.u32 %v977_v14, %v993_v54  ;;  %v998_v13 = vadd.s32 127, %v997_v7  ;;  %1132 = vst.msk [vmem:[%s2658_s3 + $0x18] sm:$0xff] %vm142_vm0, %v2499_v36  ;;  %v1118_v49 = vadd.s32 3, %v1114_v25  ;;  %vm601_vm5 = vcmp.eq.s32.totalorder %v599_v60, 0 }
 0x219   :  { %v1549_v45 = vpop.eup %1548  ;;  %v605_v0 = vxor.u32 2147483648, %v1547_v6  ;;  %vm600_vm11 = vcmp.lt.s32.totalorder %v599_v60, 2  ;;  %vm1117_vm10 = vweird.f32 %v2006_v42  ;;  %vm923_vm8 = vcmp.lt.s32.totalorder %v2173_v19, 0 }
 0x21a   :  { %v996_v38 = vor.u32 %v995_v24, %v994_v20  ;;  %v999_v35 = vshll.u32 %v998_v13, 23  ;;  %v602_v34 = vxor.u32 2147483648, %v1549_v45  ;;  %1186 = vrot.lane.b32.xlu0 %v2472_v40, %s1554_s28  ;;  %v1119_v48 = vand.u32 3, %v1118_v49 }
 0x21b   :  { %1213 = vrot.lane.b32.xlu1 %v2377_v44, %s1555_s29  ;;  %v606_v56 = vsel %vm604_vm9, %v605_v0, %v1549_v45  ;;  %vm922_vm1 = vcmp.le.f32.partialorder %v921_v15, 0.7853982  ;;  %vm1013_vm12 = vweird.f32 %v2173_v19 }
 0x21c   :  { %v1000_v28 = vor.u32 4788187, %v999_v35  ;;  %v1003_v53 = vcvt.s32.f32 %v996_v38  ;;  %v603_v31 = vsel %vm601_vm5, %v1547_v6, %v602_v34  ;;  %vm1120_vm2 = vcmp.lt.s32.totalorder %v1119_v48, 2 }
 0x21d   :  { %v607_v2 = vsel %vm600_vm11, %v603_v31, %v606_v56  ;;  %vm1121_vm3 = vcmp.eq.s32.totalorder %v1119_v48, 0  ;;  %vm1124_vm4 = vcmp.eq.s32.totalorder %v1119_v48, 2 }
 0x21e   :  { %v1001_v50 = vand.u32 2147483647, %v1000_v28  ;;  %v608_v47 = vsel %vm597_vm14, nan, %v607_v2  ;;  %v1123_v55 = vsel %vm1121_vm3, %v2435_v33, %v1122_v58  ;;  %v1126_v5 = vsel %vm1124_vm4, %v1125_v23, %v2442_v27  ;;  %1211 = vrot.lane.b32.xlu0 %v2407_v1, %s1555_s29 }
 0x21f   :  { %1221 = vrot.lane.b32.xlu1 %v2451_v26, %s1555_s29  ;;  %1131 = vst.msk [vmem:[%s2658_s3 + $0x10] sm:$0xff] %vm142_vm0, %v608_v47  ;;  %v1127_v43 = vsel %vm1120_vm2, %v1123_v55, %v1126_v5  ;;  %v1007_v33 = vsub.s32 4, %v2405_v22 }
 0x220   :  { %v1004_v44 = vmul.f32 %v1003_v53, %v1001_v50  ;;  %v1128_v59 = vsel %vm1117_vm10, nan, %v1127_v43 }
 0x221   :  { %1136 = vst.msk [vmem:[%s2658_s3 + $0x38] sm:$0xff] %vm142_vm0, %v1128_v59  ;;  %v1008_v62 = vsel %vm923_vm8, %v1007_v33, %v2405_v22 }
 0x222   :  { %v1005_v1 = vxor.u32 2147483648, %v1004_v44  ;;  %1219 = vrot.lane.b32.xlu0 %v2472_v40, %s1555_s29  ;;  %v1010_v37 = vsel %vm922_vm1, 0, %v1008_v62 }
 0x223   :  { %1151 = vrot.lane.b32.xlu1 %v2499_v36, %s1556_s27  ;;  %v1014_v10 = vadd.s32 3, %v1010_v37 }
 0x224   :  { %v1006_v42 = vsel %vm923_vm8, %v1005_v1, %v1004_v44 }
 0x225   :  { %v1009_v27 = vsel %vm922_vm1, %v2173_v19, %v1006_v42  ;;  %v1015_v8 = vand.u32 3, %v1014_v10 }
 0x226   :  { %1550 = vcosq.f32 %v1009_v27  ;;  %1149 = vrot.lane.b32.xlu0 %v608_v47, %s1556_s27 }
 0x227   :  { %1552 = vsinq.f32 %v1009_v27  ;;  %1159 = vrot.lane.b32.xlu1 %v1128_v59, %s1556_s27  ;;  %vm1020_vm15 = vcmp.eq.s32.totalorder %v1015_v8, 2  ;;  %vm1017_vm6 = vcmp.eq.s32.totalorder %v1015_v8, 0  ;;  %vm1016_vm7 = vcmp.lt.s32.totalorder %v1015_v8, 2 }
 0x22b   :  { %1184 = vrot.lane.b32.xlu1 %v2499_v36, %s1554_s28 }
 0x22f   :  { %1192 = vrot.lane.b32.xlu1 %v1128_v59, %s1554_s28 }
 0x230   :  { %v1551_v15 = vpop.eup %1550 }
 0x231   :  { %v1553_v57 = vpop.eup %1552  ;;  %v1021_v26 = vxor.u32 2147483648, %v1551_v15 }
 0x232   :  { %v1018_v22 = vxor.u32 2147483648, %v1553_v57 }
 0x233   :  { %v1022_v29 = vsel %vm1020_vm15, %v1021_v26, %v1553_v57  ;;  %1217 = vrot.lane.b32.xlu1 %v2499_v36, %s1555_s29 }
 0x234   :  { %v1019_v21 = vsel %vm1017_vm6, %v1551_v15, %v1018_v22 }
 0x235   :  { %v1023_v4 = vsel %vm1016_vm7, %v1019_v21, %v1022_v29 }
 0x236   :  { %v1024_v39 = vsel %vm1013_vm12, nan, %v1023_v4 }
 0x237   :  { %1135 = vst.msk [vmem:[%s2658_s3 + $0x30] sm:$0xff] %vm142_vm0, %v1024_v39  ;;  %1157 = vrot.lane.b32.xlu0 %v1024_v39, %s1556_s27  ;;  %1225 = vrot.lane.b32.xlu1 %v1128_v59, %s1555_s29 }
 0x23b   :  { %1182 = vrot.lane.b32.xlu0 %v608_v47, %s1554_s28 }
 0x23f   :  { %1190 = vrot.lane.b32.xlu0 %v1024_v39, %s1554_s28 }
 0x243   :  { %1215 = vrot.lane.b32.xlu0 %v608_v47, %s1555_s29 }
 0x247   :  { %1223 = vrot.lane.b32.xlu0 %v1024_v39, %s1555_s29 }
 0x273   :  { %v1148_v19 = vpop.permute.xlu1 %1147 }
 0x274   :  { %1282 = vst.msk [vmem:[%s2658_s3 + $0x48] sm:$0xff] %vm142_vm0, %v1148_v19 }
 0x279   :  { %v1146_v41 = vpop.permute.xlu0 %1145 }
 0x27a   :  { %1281 = vst.msk [vmem:[%s2658_s3 + $0x40] sm:$0xff] %vm142_vm0, %v1146_v41 }
 0x281   :  { %v1156_v17 = vpop.permute.xlu1 %1155 }
 0x282   :  { %1286 = vst.msk [vmem:[%s2658_s3 + $0x68] sm:$0xff] %vm142_vm0, %v1156_v17 }
 0x284   :  { %v1154_v16 = vpop.permute.xlu0 %1153 }
 0x285   :  { %v1181_v11 = vpop.permute.xlu1 %1180  ;;  %1285 = vst.msk [vmem:[%s2658_s3 + $0x60] sm:$0xff] %vm142_vm0, %v1154_v16 }
 0x286   :  { %1290 = vst.msk [vmem:[%s2658_s3 + $0x88] sm:$0xff] %vm142_vm0, %v1181_v11 }
 0x288   :  { %v1179_v3 = vpop.permute.xlu0 %1178 }
 0x289   :  { %v1189_v32 = vpop.permute.xlu1 %1188  ;;  %1289 = vst.msk [vmem:[%s2658_s3 + $0x80] sm:$0xff] %vm142_vm0, %v1179_v3 }
 0x28a   :  { %1294 = vst.msk [vmem:[%s2658_s3 + $0xa8] sm:$0xff] %vm142_vm0, %v1189_v32 }
 0x28c   :  { %v1187_v52 = vpop.permute.xlu0 %1186 }
 0x28d   :  { %v1214_v40 = vpop.permute.xlu1 %1213  ;;  %1293 = vst.msk [vmem:[%s2658_s3 + $0xa0] sm:$0xff] %vm142_vm0, %v1187_v52 }
 0x28e   :  { %1298 = vst.msk [vmem:[%s2658_s3 + $0xc8] sm:$0xff] %vm142_vm0, %v1214_v40 }
 0x290   :  { %v1212_v30 = vpop.permute.xlu0 %1211 }
 0x291   :  { %v1222_v12 = vpop.permute.xlu1 %1221  ;;  %1297 = vst.msk [vmem:[%s2658_s3 + $0xc0] sm:$0xff] %vm142_vm0, %v1212_v30 }
 0x292   :  { %1302 = vst.msk [vmem:[%s2658_s3 + $0xe8] sm:$0xff] %vm142_vm0, %v1222_v12 }
 0x294   :  { %v1220_v14 = vpop.permute.xlu0 %1219 }
 0x295   :  { %v1152_v18 = vpop.permute.xlu1 %1151  ;;  %1301 = vst.msk [vmem:[%s2658_s3 + $0xe0] sm:$0xff] %vm142_vm0, %v1220_v14 }
 0x296   :  { %1284 = vst.msk [vmem:[%s2658_s3 + $0x58] sm:$0xff] %vm142_vm0, %v1152_v18 }
 0x298   :  { %v1150_v63 = vpop.permute.xlu0 %1149 }
 0x299   :  { %v1160_v46 = vpop.permute.xlu1 %1159  ;;  %1283 = vst.msk [vmem:[%s2658_s3 + $0x50] sm:$0xff] %vm142_vm0, %v1150_v63 }
 0x29a   :  { %1288 = vst.msk [vmem:[%s2658_s3 + $0x78] sm:$0xff] %vm142_vm0, %v1160_v46 }
 0x29d   :  { %v1185_v51 = vpop.permute.xlu1 %1184 }
 0x29e   :  { %1292 = vst.msk [vmem:[%s2658_s3 + $0x98] sm:$0xff] %vm142_vm0, %v1185_v51 }
 0x2a1   :  { %v1193_v9 = vpop.permute.xlu1 %1192 }
 0x2a2   :  { %1296 = vst.msk [vmem:[%s2658_s3 + $0xb8] sm:$0xff] %vm142_vm0, %v1193_v9 }
 0x2a5   :  { %v1218_v54 = vpop.permute.xlu1 %1217 }
 0x2a6   :  { %1300 = vst.msk [vmem:[%s2658_s3 + $0xd8] sm:$0xff] %vm142_vm0, %v1218_v54 }
 0x2a9   :  { %v1158_v7 = vpop.permute.xlu0 %1157  ;;  %v1226_v61 = vpop.permute.xlu1 %1225 }
 0x2aa   :  { %1287 = vst.msk [vmem:[%s2658_s3 + $0x70] sm:$0xff] %vm142_vm0, %v1158_v7  ;;  %1304 = vst.msk [vmem:[%s2658_s3 + $0xf8] sm:$0xff] %vm142_vm0, %v1226_v61 }
 0x2ad   :  { %v1183_v60 = vpop.permute.xlu0 %1182 }
 0x2ae   :  { %1291 = vst.msk [vmem:[%s2658_s3 + $0x90] sm:$0xff] %vm142_vm0, %v1183_v60 }
 0x2b1   :  { %v1191_v36 = vpop.permute.xlu0 %1190 }
 0x2b2   :  { %1295 = vst.msk [vmem:[%s2658_s3 + $0xb0] sm:$0xff] %vm142_vm0, %v1191_v36 }
 0x2b5   :  { %v1216_v6 = vpop.permute.xlu0 %1215 }
 0x2b6   :  { %1299 = vst.msk [vmem:[%s2658_s3 + $0xd0] sm:$0xff] %vm142_vm0, %v1216_v6 }
 0x2b9   :  { %v1224_v20 = vpop.permute.xlu0 %1223 }
 0x2ba   :  { %1303 = vst.msk [vmem:[%s2658_s3 + $0xf0] sm:$0xff] %vm142_vm0, %v1224_v20 }

</bundles_post_ra>
